<compile_context>
chip_gen: v7x
topology: tpu7x:2x2x1
jax: 0.10.0
libtpu: 0.0.40
codegen_flags: <defaults>
</compile_context>

<pallas_src>
import functools

import jax
import jax.numpy as jnp
import numpy as np
from jax.experimental import pallas as pl
from jax.experimental.pallas import tpu as pltpu

_MIB = 1024 * 1024


def _round_up(x, m):
    return (x + m - 1) // m * m


# ----------------------------------------------------------------------------
# Kernel A: fused layer-1 for both heads.
#   grid = (M_tiles, K_tiles), K streamed ("arbitrary").
#   acc_{m,2H} += x_{m,k} @ w1cat_{k,2H}   (bf16 MXU, f32 VMEM accumulator)
#   finalize : h = relu(acc + b1cat) -> bf16
# ----------------------------------------------------------------------------
def _layer1_kernel(x_ref, w1_ref, b1_ref, h_ref, acc_ref):
    k = pl.program_id(1)

    @pl.when(k == 0)
    def _init():
        acc_ref[...] = jnp.zeros_like(acc_ref)

    acc_ref[...] += jnp.dot(x_ref[...], w1_ref[...],
                            preferred_element_type=jnp.float32)

    @pl.when(k == pl.num_programs(1) - 1)
    def _finalize():
        h_ref[...] = jnp.maximum(acc_ref[...] + b1_ref[...], 0.0).astype(h_ref.dtype)


# ----------------------------------------------------------------------------
# Kernel B: layer-2 for both heads, w2 streamed in (H, tn) column tiles.
#   grid = (M_tiles, N_tiles), both "parallel" (megacore friendly).
#   node = h_a @ w2a + b2a                (no trailing ReLU: roi_fmap head)
#   obj  = relu(h_b @ w2b + b2b)          (roi_fmap_obj, eval-mode VGG classifier)
# ----------------------------------------------------------------------------
def _layer2_kernel(h_ref, w2a_ref, b2a_ref, w2b_ref, b2b_ref,
                   node_ref, obj_ref, *, hidden):
    h_a = h_ref[:, :hidden]
    h_b = h_ref[:, hidden:]

    o_a = jnp.dot(h_a, w2a_ref[...], preferred_element_type=jnp.float32) + b2a_ref[...]
    node_ref[...] = o_a.astype(node_ref.dtype)

    o_b = jnp.dot(h_b, w2b_ref[...], preferred_element_type=jnp.float32) + b2b_ref[...]
    obj_ref[...] = jnp.maximum(o_b, 0.0).astype(obj_ref.dtype)


# ----------------------------------------------------------------------------
# One-time parameter preparation (cast to bf16, concat layer-1 weights, pad K).
# Done OUTSIDE the per-call path so the ~hundreds-of-MB weight copy/cast is not
# repeated on every forward.
# ----------------------------------------------------------------------------
def prepare_roi_head_params(node_params, obj_params, *, tile_k=1024):
    """node_params / obj_params: (w1 (K,H), b1 (1,H), w2 (H,H), b2 (1,H)) f32,
    weights stored as (in, out), i.e. torch weight.T."""
    w1a, b1a, w2a, b2a = node_params
    w1b, b1b, w2b, b2b = obj_params
    K, H = w1a.shape
    assert H % 128 == 0, "hidden dim must be lane-aligned (multiple of 128)"

    tk = min(tile_k, _round_up(K, 128))
    k_pad = _round_up(K, tk)

    w1cat = jnp.concatenate([w1a, w1b], axis=1).astype(jnp.bfloat16)
    if k_pad != K:
        w1cat = jnp.pad(w1cat, ((0, k_pad - K), (0, 0)))   # zero rows keep matmul exact
    b1cat = jnp.concatenate([b1a, b1b], axis=1).astype(jnp.float32)

    return dict(
        w1cat=w1cat, b1cat=b1cat,
        w2a=w2a.astype(jnp.bfloat16), b2a=b2a.astype(jnp.float32),
        w2b=w2b.astype(jnp.bfloat16), b2b=b2b.astype(jnp.float32),
        K=K, k_pad=k_pad, tk=tk, H=H)


# ----------------------------------------------------------------------------
# Fused eval-mode roi_fmap + roi_fmap_obj heads.
# ----------------------------------------------------------------------------
def fused_roi_heads(x_flat, params, *, tile_m=256, tile_n=512):
    """x_flat: (M, K) f32 flattened ROI-pooled features (nn.Flatten of NCHW pool).
    Returns (node_feat (M,H) f32, obj_feat (M,H) f32)."""
    M, K = x_flat.shape
    H = params["H"]
    assert K == params["K"], (K, params["K"])

    if M == 0:                                    # no ROIs: nothing to do
        z = jnp.zeros((0, H), jnp.float32)
        return z, z

    tk, k_pad = params["tk"], params["k_pad"]
    tm = min(tile_m, _round_up(M, 16))            # bf16 packs 2 rows / sublane
    m_pad = _round_up(M, tm)
    tn = min(tile_n, H)
    if H % tn:
        tn = H

    # Pad rows (M) and reduction dim (K) only on the edges; padded rows are
    # sliced off at the end, padded K columns multiply zero weight rows.
    x_p = jnp.pad(x_flat.astype(jnp.bfloat16),
                  ((0, m_pad - M), (0, k_pad - K)))

    # ------------------------- layer 1 (both heads) -------------------------
    bytes_l1 = (2 * tm * tk * 2               # x tiles, double-buffered
                + 2 * tk * (2 * H) * 2        # w1cat tiles, double-buffered
                + tm * (2 * H) * 4            # f32 accumulator scratch
                + 2 * tm * (2 * H) * 2        # h output tiles, double-buffered
                + 2 * (2 * H) * 4)            # bias
    vmem_l1 = min(max(int(bytes_l1 * 1.5), 32 * _MIB), 64 * _MIB)

    h_cat = pl.pallas_call(
        _layer1_kernel,
        out_shape=jax.ShapeDtypeStruct((m_pad, 2 * H), jnp.bfloat16),
        grid_spec=pltpu.PrefetchScalarGridSpec(
            num_scalar_prefetch=0,
            grid=(m_pad // tm, k_pad // tk),
            in_specs=[
                pl.BlockSpec((tm, tk), lambda i, k: (i, k)),      # x tile
                pl.BlockSpec((tk, 2 * H), lambda i, k: (k, 0)),   # w1cat, K-streamed
                pl.BlockSpec((1, 2 * H), lambda i, k: (0, 0)),    # b1cat
            ],
            out_specs=pl.BlockSpec((tm, 2 * H), lambda i, k: (i, 0)),
            scratch_shapes=[pltpu.VMEM((tm, 2 * H), jnp.float32)],
        ),
        compiler_params=pltpu.CompilerParams(
            dimension_semantics=("parallel", "arbitrary"),
            vmem_limit_bytes=vmem_l1),
    )(x_p, params["w1cat"], params["b1cat"])

    # ------------------------- layer 2 (both heads) -------------------------
    bytes_l2 = (2 * tm * (2 * H) * 2          # h tiles, double-buffered
                + 2 * 2 * H * tn * 2          # w2a / w2b column tiles
                + 2 * 2 * tm * tn * 4         # node / obj output tiles
                + 2 * 2 * tn * 4)             # biases
    vmem_l2 = min(max(int(bytes_l2 * 1.5), 32 * _MIB), 64 * _MIB)

    node, obj = pl.pallas_call(
        functools.partial(_layer2_kernel, hidden=H),
        out_shape=(jax.ShapeDtypeStruct((m_pad, H), jnp.float32),
                   jax.ShapeDtypeStruct((m_pad, H), jnp.float32)),
        grid_spec=pltpu.PrefetchScalarGridSpec(
            num_scalar_prefetch=0,
            grid=(m_pad // tm, H // tn),
            in_specs=[
                pl.BlockSpec((tm, 2 * H), lambda i, n: (i, 0)),   # h (both halves), resident over n
                pl.BlockSpec((H, tn), lambda i, n: (0, n)),       # w2a column tile
                pl.BlockSpec((1, tn), lambda i, n: (0, n)),       # b2a
                pl.BlockSpec((H, tn), lambda i, n: (0, n)),       # w2b column tile
                pl.BlockSpec((1, tn), lambda i, n: (0, n)),       # b2b
            ],
            out_specs=[pl.BlockSpec((tm, tn), lambda i, n: (i, n)),
                       pl.BlockSpec((tm, tn), lambda i, n: (i, n))],
        ),
        compiler_params=pltpu.CompilerParams(
            dimension_semantics=("parallel", "parallel"),
            vmem_limit_bytes=vmem_l2),
    )(h_cat, params["w2a"], params["b2a"], params["w2b"], params["b2b"])

    return node[:M], obj[:M]


# ----------------------------------------------------------------------------
# node_edge_features union-box construction (plain JAX: tiny, lane-hostile op;
# XLA fuses the gather + min/max better than a (R,5) Pallas kernel would).
# ----------------------------------------------------------------------------
def union_rois(rois, union_inds):
    r0 = rois[union_inds[:, 0]]
    r1 = rois[union_inds[:, 1]]
    return jnp.concatenate(
        [r0[:, 0:1],
         jnp.minimum(r0[:, 1:3], r1[:, 1:3]),
         jnp.maximum(r0[:, 3:5], r1[:, 3:5])], axis=1)


# ----------------------------------------------------------------------------
# Plain-JAX references mirroring the kernel's bf16-weight / f32-accumulate math.
# ----------------------------------------------------------------------------
def roi_head_ref(x, w1, b1, w2, b2, final_relu):
    rb = lambda a: a.astype(jnp.bfloat16).astype(jnp.float32)
    h = jnp.maximum(jnp.dot(rb(x), rb(w1)) + b1, 0.0)
    o = jnp.dot(rb(h), rb(w2)) + b2
    return jnp.maximum(o, 0.0) if final_relu else o


if __name__ == "__main__":
    # --- small shapes consistent with the module ---
    pool_sz = 7                        # self.pool_sz
    edge_dim = 32                      # scaled-down detector.backbone.out_channels (512)
    obj_dim = 256                      # scaled-down self.obj_dim (4096); lane-aligned
    n_rois = 16                        # ROIs across the batch
    K = edge_dim * pool_sz * pool_sz   # flattened ROI feature dim (1568)

    key = jax.random.PRNGKey(0)
    (k_feat, k_w1a, k_b1a, k_w2a, k_b2a,
     k_w1b, k_b1b, k_w2b, k_b2b, k_box) = jax.random.split(key, 10)

    # ROI-pooled features, NCHW like torchvision MultiScaleRoIAlign output.
    roi_feats = jax.random.normal(k_feat, (n_rois, edge_dim, pool_sz, pool_sz),
                                  dtype=jnp.float32)

    # roi_fmap classifier params (stored as (in, out), i.e. torch weight.T).
    w1a = jax.random.normal(k_w1a, (K, obj_dim), dtype=jnp.float32) * 0.02
    b1a = jax.random.normal(k_b1a, (1, obj_dim), dtype=jnp.float32) * 0.01
    w2a = jax.random.normal(k_w2a, (obj_dim, obj_dim), dtype=jnp.float32) * 0.02
    b2a = jax.random.normal(k_b2a, (1, obj_dim), dtype=jnp.float32) * 0.01
    # roi_fmap_obj classifier params (independent VGG copy in the module).
    w1b = jax.random.normal(k_w1b, (K, obj_dim), dtype=jnp.float32) * 0.02
    b1b = jax.random.normal(k_b1b, (1, obj_dim), dtype=jnp.float32) * 0.01
    w2b = jax.random.normal(k_w2b, (obj_dim, obj_dim), dtype=jnp.float32) * 0.02
    b2b = jax.random.normal(k_b2b, (1, obj_dim), dtype=jnp.float32) * 0.01

    # ROIs: [im_ind, x1, y1, x2, y2] for 2 images x 8 boxes each.
    im_inds = np.array([0] * 8 + [1] * 8, dtype=np.int32)
    xy1 = jax.random.uniform(k_box, (n_rois, 2), dtype=jnp.float32) * 50.0
    wh = jax.random.uniform(jax.random.fold_in(k_box, 1), (n_rois, 2),
                            dtype=jnp.float32) * 60.0 + 5.0
    rois = jnp.concatenate(
        [jnp.asarray(im_inds, jnp.float32)[:, None], xy1, xy1 + wh], axis=1)

    # rel_inds (eval-mode get_rel_inds semantics: all same-image, off-diagonal
    # pairs), built deterministically in glue since nonzero() is data-dependent.
    pairs = [(i, j) for i in range(n_rois) for j in range(n_rois)
             if i != j and im_inds[i] == im_inds[j]]
    union_inds = jnp.asarray(np.array(pairs, dtype=np.int32))

    # --- prepare params once (parameter-load time), then run kernels ---
    prepared = prepare_roi_head_params(
        (w1a, b1a, w2a, b2a), (w1b, b1b, w2b, b2b))

    x_flat = roi_feats.reshape(n_rois, K)                 # nn.Flatten
    node_feat, obj_feat = fused_roi_heads(x_flat, prepared)
    u_rois = union_rois(rois, union_inds)                 # node_edge_features glue

    jax.block_until_ready((node_feat, obj_feat, u_rois))

    # --- correctness vs plain-JAX references ---
    np.testing.assert_allclose(
        np.asarray(node_feat),
        np.asarray(roi_head_ref(x_flat, w1a, b1a, w2a, b2a, False)),
        rtol=2e-2, atol=2e-2)
    np.testing.assert_allclose(
        np.asarray(obj_feat),
        np.asarray(roi_head_ref(x_flat, w1b, b1b, w2b, b2b, True)),
        rtol=2e-2, atol=2e-2)

    r0 = np.asarray(rois)[np.asarray(union_inds)[:, 0]]
    r1 = np.asarray(rois)[np.asarray(union_inds)[:, 1]]
    u_ref = np.concatenate([r0[:, 0:1],
                            np.minimum(r0[:, 1:3], r1[:, 1:3]),
                            np.maximum(r0[:, 3:5], r1[:, 3:5])], axis=1)
    np.testing.assert_allclose(np.asarray(u_rois), u_ref, rtol=1e-6, atol=1e-6)

    print("KERNEL_OK")
</pallas_src>

<mosaic_0001>
module attributes {stable_mosaic.version = 11 : i64} {
  func.func @_layer1_kernel(%arg0: i32, %arg1: i32, %arg2: memref<16x1024xbf16, #tpu.memory_space<vmem>>, %arg3: memref<1024x512xbf16, #tpu.memory_space<vmem>>, %arg4: memref<1x512xf32, #tpu.memory_space<vmem>>, %arg5: memref<16x512xbf16, #tpu.memory_space<vmem>>, %arg6: memref<16x512xf32, #tpu.memory_space<vmem>>) attributes {dimension_semantics = [#tpu.dimension_semantics<parallel>, #tpu.dimension_semantics<arbitrary>], iteration_bounds = array<i64: 1, 2>, scalar_prefetch = 0 : i64, scratch_operands = 1 : i64, tpu.core_type = #tpu.core_type<tc>, window_params = [{transform_indices = @transform_0, window_bounds = array<i64: 16, 1024>}, {transform_indices = @transform_1, window_bounds = array<i64: 1024, 512>}, {pipeline_mode = #tpu.pipeline_mode<synchronous>, transform_indices = @transform_2, window_bounds = array<i64: 1, 512>}, {transform_indices = @transform_3, window_bounds = array<i64: 16, 512>}]} {
    %c0_i32 = arith.constant 0 : i32
    %0 = arith.cmpi eq, %arg1, %c0_i32 : i32
    %1 = arith.extui %0 : i1 to i32
    %c0_i32_0 = arith.constant 0 : i32
    %2 = arith.cmpi ne, %1, %c0_i32_0 : i32
    scf.if %2 {
      %cst_9 = arith.constant 0.000000e+00 : f32
      %12 = vector.broadcast %cst_9 : f32 to vector<16x512xf32>
      %c0_10 = arith.constant 0 : index
      %c0_11 = arith.constant 0 : index
      %13 = vector.load %arg6[%c0_10, %c0_11] : memref<16x512xf32, #tpu.memory_space<vmem>>, vector<16x512xf32>
      tpu.vector_store %arg6[%c0_10, %c0_11], %12 {strides = array<i32>} : memref<16x512xf32, #tpu.memory_space<vmem>>, vector<16x512xf32>,
    } else {
    }
    %c0 = arith.constant 0 : index
    %c0_1 = arith.constant 0 : index
    %3 = vector.load %arg6[%c0, %c0_1] : memref<16x512xf32, #tpu.memory_space<vmem>>, vector<16x512xf32>
    %c0_2 = arith.constant 0 : index
    %c0_3 = arith.constant 0 : index
    %4 = vector.load %arg2[%c0_2, %c0_3] : memref<16x1024xbf16, #tpu.memory_space<vmem>>, vector<16x1024xbf16>
    %c0_4 = arith.constant 0 : index
    %c0_5 = arith.constant 0 : index
    %5 = vector.load %arg3[%c0_4, %c0_5] : memref<1024x512xbf16, #tpu.memory_space<vmem>>, vector<1024x512xbf16>
    %cst = arith.constant dense<0.000000e+00> : vector<16x512xf32>
    %6 = tpu.matmul %4, %5, %cst {dimension_numbers = #tpu.dot_dimension_numbers<[1], [0], [0], [1], [0, 0, 1, 1], [], []>} : vector<16x1024xbf16>, vector<1024x512xbf16>, vector<16x512xf32> -> vector<16x512xf32>
    %7 = arith.addf %3, %6 : vector<16x512xf32>
    %c0_6 = arith.constant 0 : index
    %c0_7 = arith.constant 0 : index
    %8 = vector.load %arg6[%c0_6, %c0_7] : memref<16x512xf32, #tpu.memory_space<vmem>>, vector<16x512xf32>
    tpu.vector_store %arg6[%c0_6, %c0_7], %7 {strides = array<i32>} : memref<16x512xf32, #tpu.memory_space<vmem>>, vector<16x512xf32>,
    %c1_i32 = arith.constant 1 : i32
    %9 = arith.cmpi eq, %arg1, %c1_i32 : i32
    %10 = arith.extui %9 : i1 to i32
    %c0_i32_8 = arith.constant 0 : i32
    %11 = arith.cmpi ne, %10, %c0_i32_8 : i32
    scf.if %11 {
      %c0_9 = arith.constant 0 : index
      %c0_10 = arith.constant 0 : index
      %12 = vector.load %arg6[%c0_9, %c0_10] : memref<16x512xf32, #tpu.memory_space<vmem>>, vector<16x512xf32>
      %c0_11 = arith.constant 0 : index
      %c0_12 = arith.constant 0 : index
      %13 = vector.load %arg4[%c0_11, %c0_12] : memref<1x512xf32, #tpu.memory_space<vmem>>, vector<1x512xf32>
      %14 = vector.broadcast %13 : vector<1x512xf32> to vector<16x512xf32>
      %15 = arith.addf %12, %14 : vector<16x512xf32>
      %cst_13 = arith.constant 0.000000e+00 : f32
      %16 = vector.broadcast %cst_13 : f32 to vector<16x512xf32>
      %17 = arith.maximumf %15, %16 : vector<16x512xf32>
      %18 = arith.truncf %17 : vector<16x512xf32> to vector<16x512xbf16>
      %c0_14 = arith.constant 0 : index
      %c0_15 = arith.constant 0 : index
      %19 = vector.load %arg5[%c0_14, %c0_15] : memref<16x512xbf16, #tpu.memory_space<vmem>>, vector<16x512xbf16>
      tpu.vector_store %arg5[%c0_14, %c0_15], %18 {strides = array<i32>} : memref<16x512xbf16, #tpu.memory_space<vmem>>, vector<16x512xbf16>,
    } else {
    }
    return
  }
  func.func @transform_0(%arg0: i32, %arg1: i32) -> (i32, i32) {
    %c0_i32 = arith.constant 0 : i32
    return %arg0, %arg1 : i32, i32
  }
  func.func @transform_1(%arg0: i32, %arg1: i32) -> (i32, i32) {
    %c0_i32 = arith.constant 0 : i32
    %c0_i32_0 = arith.constant 0 : i32
    return %arg1, %c0_i32 : i32, i32
  }
  func.func @transform_2(%arg0: i32, %arg1: i32) -> (i32, i32) {
    %c0_i32 = arith.constant 0 : i32
    %c0_i32_0 = arith.constant 0 : i32
    %c0_i32_1 = arith.constant 0 : i32
    return %c0_i32, %c0_i32_0 : i32, i32
  }
  func.func @transform_3(%arg0: i32, %arg1: i32) -> (i32, i32) {
    %c0_i32 = arith.constant 0 : i32
    %c0_i32_0 = arith.constant 0 : i32
    return %arg0, %c0_i32 : i32, i32
  }
}

</mosaic_0001>

<bundles_post_ra>
// kernel: tpu_custom_call.1
= control target key start
LH: loop header
LB: loop body
LE: loop exit
PB: predicated region body
PF: predicated region fallthrough
CT: control target
= control target key end

     0   :  { %s3924_s0 = inlined_call_operand.hbm [shape: bf16[16,2048], index: 0, kind: input, shape index: {}]   ;;  %s3925_s1 = inlined_call_operand.hbm [shape: bf16[2048,512], index: 1, kind: input, shape index: {}]   ;;  %s3926_s2 = inlined_call_operand.hbm [shape: f32[1,512], index: 2, kind: input, shape index: {}]   ;;  %s3927_s3 = inlined_call_operand.hbm [shape: bf16[16,512], index: 3, kind: output, shape index: {}]  }
   0x1   :  { %3932 = sst [smem:[#allocation14_spill]] %s3924_s0 }
   0x2   :  { %8 = vsyncpa [#allocation4], 0 }
   0x3   :  { %10 = vsyncpa [#allocation4 + $0x1], 0 }
   0x4   :  { %11 = vsyncpa [#allocation7], 0 }
   0x5   :  { %13 = vsyncpa [#allocation7 + $0x1], 0 }
   0x6   :  { %14 = vsyncpa [#allocation5], 0  ;;  %s3407_s12 = smov 0   ;;  %s3409_s13 = smov 0  }
   0x7   :  { %s3411_s14 = smov 0   ;;  %s3413_s15 = smov 0  }
   0x8   :  { %s3415_s16 = smov 0   ;;  %s3417_s17 = smov 0  }
   0x9 LB: > { %s3436_s18 = sadd.s32 4294967295, %s3373_s17   ;;  %s41_s19 = sadd.s32 1, %s3361_s14  ;;  %s3373_s17 = sphi %s3417_s17, %s20_s17   ;;  %s3369_s16 = sphi %s3415_s16, %s3947_s16   ;;  %s3365_s15 = sphi %s3413_s15, %s3946_s15   ;;  %s3361_s14 = sphi %s3411_s14, %s3945_s14   ;;  %s3357_s13 = sphi %s3409_s13, %s3944_s13   ;;  %s3353_s12 = sphi %s3407_s12, %s3943_s12  }
   0xa   : > { %p48_p0 = scmp.ne.s32.totalorder %s3361_s14, %s3357_s13  ;;  %p49_p1 = scmp.eq.s32.totalorder %s3373_s17, 0 }
   0xb   : > { %p54_p2 = scmp.ne.s32.totalorder %s3357_s13, %s3353_s12  ;;  %p3928_p3 = scmp.eq.s32.totalorder %s3436_s18, 0 }
   0xc   : > { %p50_p4 = por %p49_p1, %p48_p0  ;;  %p2408_p5 = scmp.ge.s32.totalorder %s3373_s17, 1 }
   0xd   : > { %p3447_p6 = por %p3928_p3, %p54_p2  ;;  %p138_p7 = scmp.lt.s32.totalorder %s3373_s17, 3 }
   0xe   : > { %s3375_s22 = smov [#allocation8]   ;;  %p2751_p10 = scmp.lt.s32.totalorder %s3373_s17, 2 }
   0xf   : > { %s3933_s20 = scalar_select %p3447_p6, 1, 0 }
  0x10   : > { %p3452_p8 = pnand %p2408_p5, %p138_p7  ;;  %s151_s23 = sshll.u32 %s3375_s22, 4  ;;  %s152_s23 = int_to_ptr.vmem [resolvable:$true] %s151_s23 }
  0x11   : > { %s3460_s24 = sand.u32 1, %s3361_s14   ;;  %p3468_p12 = pnand %p2751_p10, %p50_p4 }
  0x12   : > { %s3934_s21 = scalar_select %p3452_p8, 1, 0 }
  0x13   : > { %p2739_p9 = pneg %p3452_p8  ;;  %s3197_s29 = scalar_lea.hbm %s3926_s2, 64 }
  0x14   : > { %s3936_s26 = scalar_select %p3468_p12, 1, 0 }
  0x15   : > { %p3464_p11 = pnand %p2739_p9, %p3928_p3  ;;  %p3198_p13 = scmp.ne.s32.totalorder %s3926_s2, %s3197_s29 }
  0x16   : > { %p3204_p5 = scmp.lt.u32.totalorder %s3197_s29, %s3926_s2 }
  0x17   : > { %p3199_p0 = pneg %p3464_p11 }
  0x19   : > { %p3200_p1 = pnand %p3199_p0, %p3198_p13 }
  0x1b   : > { %p3201_p2 = pneg %p3200_p1 }
  0x1d   : > { %p3206_p4 = pnand %p3204_p5, %p3201_p2 }
  0x1f   : > { %3209 = shalt.err (!%p3206_p4)
}
  0x20   : > { %s3210_s7 = scalar_lea.vmem %s152_s23, 64  ;;  %p3218_p3 = scmp.lt.s32.totalorder %s152_s23, %s152_s23 }
  0x21   : > { %p3211_p7 = scmp.ne.s32.totalorder %s152_s23, %s3210_s7  ;;  %p3219_p6 = scmp.lt.s32.totalorder %s3210_s7, %s3210_s7 }
  0x23   : > { %p3213_p9 = pnand %p3211_p7, %p3199_p0  ;;  %p3220_p8 = por %p3219_p6, %p3218_p3 }
  0x25   : > { %p3214_p10 = pneg %p3213_p9 }
  0x27   : > { %p3221_p12 = pnand %p3220_p8, %p3214_p10 }
  0x29   : > { %3224 = shalt.err (!%p3221_p12)
}
  0x2a   : > { %2742 = dma.hbm_to_vmem [thread:$0]  (!%p3464_p11), %s3926_s2, 64, %s152_s23, [#allocation7]  }
  0x2b   : > { %s29_s10 = sadd.s32 1, %s3369_s16  ;;  %s2411_s11 = sshll.u32 %s3460_s24, 6 }
  0x2c   : > { %p30_p3 = scmp.ge.s32.totalorder %s29_s10, 2  ;;  %s2696_s12 = sshll.u32 %s3369_s16, 9 }
  0x2d   : > { %s166_s22 = scalar_lea.vmem [#allocation3], %s2411_s11  ;;  %s3937_s0 = sld [smem:[#allocation14_spill]] }
  0x2e   : > { %s176_s25 = sshll.u32 %s166_s22, 4  ;;  %s3949_s10 = smov (%p30_p3, %s29_s10), 0  ;;  %s3498_s25 = int_to_ptr.vmem [resolvable:$true] %s176_s25 }
  0x2f   : > { %s37_s23 = ssub.s32 %s3369_s16, %s3949_s10  ;;  %s186_s30 = sand.u32 1, %s3373_s17  }
  0x30   : > { %p39_p6 = scmp.eq.s32.totalorder %s37_s23, 0  ;;  %s163_s5 = scalar_lea.sflag [#allocation4], %s3460_s24 }
  0x31   : > { %p3938_p11 = scmp.ne.s32.totalorder %s3936_s26, 0 }
  0x32   : > { %s3506_s4 = scalar_select %p39_p6, %s3361_s14, %s41_s19  }
  0x33   : > { %s3496_s29 = scalar_lea.hbm %s3937_s0, %s2696_s12  ;;  %p3227_p12 = pneg %p3938_p11 }
  0x34   : > { %s3225_s6 = scalar_lea.hbm %s3496_s29, 1024  ;;  %s3230_s9 = scalar_lea.hbm %s3937_s0, 2048 }
  0x35   : > { %p3226_p8 = scmp.ne.s32.totalorder %s3496_s29, %s3225_s6  ;;  %p3231_p1 = scmp.lt.u32.totalorder %s3496_s29, %s3937_s0 }
  0x36   : > { %p3232_p2 = scmp.lt.u32.totalorder %s3230_s9, %s3225_s6  ;;  %p3234_p4 = scmp.lt.u32.totalorder %s3225_s6, %s3496_s29 }
  0x37   : > { %p3228_p13 = pnand %p3227_p12, %p3226_p8 }
  0x38   : > { %p3233_p5 = por %p3232_p2, %p3231_p1 }
  0x39   : > { %p3229_p0 = pneg %p3228_p13 }
  0x3a   : > { %p3235_p7 = por %p3234_p4, %p3233_p5 }
  0x3c   : > { %p3236_p9 = pnand %p3235_p7, %p3229_p0 }
  0x3e   : > { %3239 = shalt.err (!%p3236_p9)
}
  0x3f   : > { %s3240_s19 = scalar_lea.vmem %s3498_s25, 1024  ;;  %s3376_s22 = smov [#allocation3]  }
  0x40   : > { %p3241_p10 = scmp.ne.s32.totalorder %s3498_s25, %s3240_s19  ;;  %s3245_s27 = sshll.u32 %s3376_s22, 4  ;;  %s3246_s27 = int_to_ptr.vmem [resolvable:$false] %s3245_s27 }
  0x41   : > { %s3247_s28 = scalar_lea.vmem %s3246_s27, 2048  ;;  %p3248_p8 = scmp.lt.s32.totalorder %s3498_s25, %s3246_s27 }
  0x42   : > { %p3243_p3 = pnand %p3241_p10, %p3227_p12  ;;  %p3249_p13 = scmp.lt.s32.totalorder %s3247_s28, %s3240_s19 }
  0x44   : > { %p3244_p6 = pneg %p3243_p3  ;;  %p3250_p1 = por %p3249_p13, %p3248_p8 }
  0x46   : > { %p3251_p2 = pnand %p3250_p1, %p3244_p6 }
  0x48   : > { %3254 = shalt.err (!%p3251_p2)
}
  0x49   : > { %s3377_s23 = smov 1024   ;;  %s3378_s6 = smov 512  }
  0x4a   : > { %s3379_s7 = smov 32   ;;  %s2414_s8 = sshll.u32 %s3460_s24, 11 }
  0x4b   : > { %2746 = dma.hbm_to_vmem [thread:$0]  (!%p3938_p11), %s3496_s29, 1024, %s3498_s25, %s163_s5, %s3377_s23, %s3378_s6, %s3379_s7  }
  0x4c   : > { %s2698_s9 = sshll.u32 %s3369_s16, 15  ;;  %s190_s22 = scalar_lea.vmem [#allocation6], %s2414_s8 }
  0x4d   : > { %s3541_s19 = scalar_lea.hbm %s3925_s1, %s2698_s9  ;;  %s198_s27 = sshll.u32 %s190_s22, 4  ;;  %s3543_s27 = int_to_ptr.vmem [resolvable:$true] %s198_s27 }
  0x4e   : > { %s3547_s28 = scalar_lea.sflag [#allocation7], %s186_s30  ;;  %s3255_s0 = scalar_lea.hbm %s3541_s19, 32768 }
  0x4f   : > { %p3256_p0 = scmp.ne.s32.totalorder %s3541_s19, %s3255_s0  ;;  %s3260_s29 = scalar_lea.hbm %s3925_s1, 65536 }
  0x50   : > { %p3261_p7 = scmp.lt.u32.totalorder %s3541_s19, %s3925_s1  ;;  %p3262_p9 = scmp.lt.u32.totalorder %s3260_s29, %s3255_s0 }
  0x51   : > { %p3258_p5 = pnand %p3256_p0, %p3227_p12  ;;  %p3264_p3 = scmp.lt.u32.totalorder %s3255_s0, %s3541_s19 }
  0x52   : > { %p3263_p10 = por %p3262_p9, %p3261_p7 }
  0x53   : > { %p3259_p4 = pneg %p3258_p5 }
  0x54   : > { %p3265_p6 = por %p3264_p3, %p3263_p10 }
  0x56   : > { %p3266_p8 = pnand %p3265_p6, %p3259_p4 }
  0x58   : > { %3269 = shalt.err (!%p3266_p8)
}
  0x59   : > { %s3270_s30 = scalar_lea.vmem %s3543_s27, 32768  ;;  %s3380_s6 = smov [#allocation6]  }
  0x5a   : > { %p3271_p13 = scmp.ne.s32.totalorder %s3543_s27, %s3270_s30  ;;  %s3275_s7 = sshll.u32 %s3380_s6, 4  ;;  %s3276_s7 = int_to_ptr.vmem [resolvable:$false] %s3275_s7 }
  0x5b   : > { %s3277_s8 = scalar_lea.vmem %s3276_s7, 65536  ;;  %p3278_p0 = scmp.lt.s32.totalorder %s3543_s27, %s3276_s7 }
  0x5c   : > { %p3273_p1 = pnand %p3271_p13, %p3227_p12  ;;  %p3279_p5 = scmp.lt.s32.totalorder %s3277_s8, %s3270_s30 }
  0x5e   : > { %p3274_p2 = pneg %p3273_p1  ;;  %p3280_p7 = por %p3279_p5, %p3278_p0 }
  0x60   : > { %p3281_p9 = pnand %p3280_p7, %p3274_p2 }
  0x62   : > { %3284 = shalt.err (!%p3281_p9)
}
  0x63   : > { %s3381_s0 = smov 256   ;;  %s3382_s9 = smov 16  }
  0x64   : > { %2749 = dma.hbm_to_vmem [thread:$0]  (!%p3938_p11), %s3541_s19, 32768, %s3543_s27, %s3547_s28, %s3381_s0, %s3381_s0, %s3382_s9  }
  0x65   : > { %p3939_p12 = scmp.ne.s32.totalorder %s3934_s21, 0 }
  0x66   : > { %s212_s11 = sand.u32 (!%p3939_p12), 1, %s3357_s13   ;;  %p3940_p4 = scmp.ne.s32.totalorder (!%p3939_p12), %s3933_s20, 0 }
  0x67   : > { %210 = sbr.rel (%p3939_p12) target bundleno = 641 (0x281), region = 32  ;;  %s2419_s12 = sshll.u32 (!%p3939_p12), %s212_s11, 6 }
  0x68   : > { %s213_s22 = scalar_lea.sflag (!%p3939_p12), [#allocation4], %s212_s11  ;;  %s3576_s24 = scalar_lea.vmem (!%p3939_p12), [#allocation3], %s2419_s12 }
  0x6e   : > { %3336 = dma.done.wait (%p3940_p4), %s213_s22, 1024  }
  0x6f   : > { %3338 = vsyncadd (%p3940_p4), %s213_s22, 4294966272  ;;  %s221_s25 = sand.u32 1, %s3436_s18   ;;  %s2420_s26 = sshll.u32 %s212_s11, 11 }
  0x70   : > { %s222_s19 = scalar_lea.sflag [#allocation7], %s221_s25  ;;  %s3583_s27 = scalar_lea.vmem [#allocation6], %s2420_s26 }
  0x71   : > { %3340 = dma.done.wait (%p3940_p4), %s222_s19, 32768  }
  0x72   : > { %3342 = vsyncadd (%p3940_p4), %s222_s19, 4294934528  ;;  %p3941_p11 = scmp.eq.s32.totalorder %s3436_s18, 0 }
  0x74   : > { %3344 = dma.done.wait (%p3941_p11), [#allocation7], 64   ;;  %p3942_p10 = pmov %p3941_p11 }
  0x75   : > { %p2422_p3 = scmp.ne.s32.totalorder %s3365_s15, 0 }
  0x76   : > { %3346 = vsyncadd (%p3942_p10), [#allocation7], 4294967232  ;;  %v3383_v0 = vmov (!%p2422_p3), 0.0  }
  0x77   : > { %259 = sbr.rel (%p2422_p3) target bundleno = 126 (0x7e), region = 48  ;;  %260 = vst [vmem:[#allocation2] sm:$0xff] (!%p2422_p3), %v3383_v0  ;;  %261 = vst [vmem:[#allocation2 + $0x8] sm:$0xff] (!%p2422_p3), %v3383_v0 }
  0x78   : > { %262 = vst [vmem:[#allocation2 + $0x10] sm:$0xff] (!%p2422_p3), %v3383_v0  ;;  %263 = vst [vmem:[#allocation2 + $0x18] sm:$0xff] (!%p2422_p3), %v3383_v0 }
  0x79   : > { %264 = vst [vmem:[#allocation2 + $0x20] sm:$0xff] (!%p2422_p3), %v3383_v0  ;;  %265 = vst [vmem:[#allocation2 + $0x28] sm:$0xff] (!%p2422_p3), %v3383_v0 }
  0x7a   : > { %266 = vst [vmem:[#allocation2 + $0x30] sm:$0xff] (!%p2422_p3), %v3383_v0  ;;  %267 = vst [vmem:[#allocation2 + $0x38] sm:$0xff] (!%p2422_p3), %v3383_v0 }
  0x7e PF: > { %v2813_v1 = vld [vmem:[%s3583_s27 + $0x4] ss:$16 sps:$4 sm:$0xff]   ;;  %v2815_v2 = vld [vmem:[%s3583_s27 + $0xc] ss:$16 sps:$4 sm:$0xff]   ;;  %v2817_v3 = vld [vmem:[%s3583_s27] ss:$16 sps:$4 sm:$0xff]  }
  0x7f   : > { %1860 = vmatprep.subr.bf16.mxu0 %v2813_v1  ;;  %v2818_v4 = vld [vmem:[%s3583_s27 + $0x8] ss:$16 sps:$4 sm:$0xff]   ;;  %2032 = vmatprep.subr.bf16.mxu1 %v2815_v2  ;;  %v2819_v5 = vld [vmem:[%s3583_s27 + $0x24] ss:$16 sps:$4 sm:$0xff]   ;;  %v2821_v6 = vld [vmem:[%s3583_s27 + $0x2c] ss:$16 sps:$4 sm:$0xff]  }
  0x80   : > { %1861 = vmatpush1.bf16.msra.mxu0 %v2817_v3  ;;  %2033 = vmatpush1.bf16.msra.mxu1 %v2818_v4  ;;  %v2823_v7 = vld [vmem:[%s3583_s27 + $0x20] ss:$16 sps:$4 sm:$0xff]   ;;  %v2824_v8 = vld [vmem:[%s3583_s27 + $0x28] ss:$16 sps:$4 sm:$0xff]   ;;  %v2825_v9 = vld [vmem:[%s3583_s27 + $0x44] ss:$16 sps:$4 sm:$0xff]  }
  0x81   : > { %1862 = vmatprep.subr.bf16.mxu0 %v2819_v5  ;;  %2034 = vmatprep.subr.bf16.mxu1 %v2821_v6  ;;  %v2827_v10 = vld [vmem:[%s3583_s27 + $0x4c] ss:$16 sps:$4 sm:$0xff]   ;;  %v2829_v11 = vld [vmem:[%s3583_s27 + $0x40] ss:$16 sps:$4 sm:$0xff]   ;;  %v2830_v12 = vld [vmem:[%s3583_s27 + $0x48] ss:$16 sps:$4 sm:$0xff]  }
  0x82   : > { %v2831_v13 = vld [vmem:[%s3583_s27 + $0x64] ss:$16 sps:$4 sm:$0xff]   ;;  %v2833_v14 = vld [vmem:[%s3583_s27 + $0x6c] ss:$16 sps:$4 sm:$0xff]   ;;  %v2835_v15 = vld [vmem:[%s3583_s27 + $0x60] ss:$16 sps:$4 sm:$0xff]  }
  0x83   : > { %v2836_v16 = vld [vmem:[%s3583_s27 + $0x68] ss:$16 sps:$4 sm:$0xff]   ;;  %v2837_v17 = vld [vmem:[%s3583_s27 + $0x84] ss:$16 sps:$4 sm:$0xff]   ;;  %v2839_v18 = vld [vmem:[%s3583_s27 + $0x8c] ss:$16 sps:$4 sm:$0xff]  }
  0x84   : > { %1863 = vmatpush1.bf16.msra.mxu0 %v2823_v7  ;;  %2035 = vmatpush1.bf16.msra.mxu1 %v2824_v8  ;;  %v2841_v19 = vld [vmem:[%s3583_s27 + $0x80] ss:$16 sps:$4 sm:$0xff]   ;;  %v2842_v20 = vld [vmem:[%s3583_s27 + $0x88] ss:$16 sps:$4 sm:$0xff]   ;;  %v2843_v21 = vld [vmem:[%s3583_s27 + $0xa4] ss:$16 sps:$4 sm:$0xff]  }
  0x85   : > { %1864 = vmatprep.subr.bf16.mxu0 %v2825_v9  ;;  %2036 = vmatprep.subr.bf16.mxu1 %v2827_v10  ;;  %v2845_v22 = vld [vmem:[%s3583_s27 + $0xac] ss:$16 sps:$4 sm:$0xff]   ;;  %v2847_v23 = vld [vmem:[%s3583_s27 + $0xa0] ss:$16 sps:$4 sm:$0xff]   ;;  %v2848_v24 = vld [vmem:[%s3583_s27 + $0xa8] ss:$16 sps:$4 sm:$0xff]  }
  0x86   : > { %v2849_v25 = vld [vmem:[%s3583_s27 + $0xc4] ss:$16 sps:$4 sm:$0xff]   ;;  %v2851_v26 = vld [vmem:[%s3583_s27 + $0xcc] ss:$16 sps:$4 sm:$0xff]   ;;  %v2853_v27 = vld [vmem:[%s3583_s27 + $0xc0] ss:$16 sps:$4 sm:$0xff]  }
  0x87   : > { %v2854_v28 = vld [vmem:[%s3583_s27 + $0xc8] ss:$16 sps:$4 sm:$0xff]   ;;  %v2855_v29 = vld [vmem:[%s3583_s27 + $0xe4] ss:$16 sps:$4 sm:$0xff]   ;;  %v2857_v30 = vld [vmem:[%s3583_s27 + $0xec] ss:$16 sps:$4 sm:$0xff]  }
  0x88   : > { %1865 = vmatpush1.bf16.msra.mxu0 %v2829_v11  ;;  %2037 = vmatpush1.bf16.msra.mxu1 %v2830_v12  ;;  %v2859_v31 = vld [vmem:[%s3583_s27 + $0xe0] ss:$16 sps:$4 sm:$0xff]   ;;  %v2860_v32 = vld [vmem:[%s3583_s27 + $0xe8] ss:$16 sps:$4 sm:$0xff]   ;;  %v2861_v33 = vld [vmem:[%s3583_s27 + $0x104] ss:$16 sps:$4 sm:$0xff]  }
  0x89   : > { %1866 = vmatprep.subr.bf16.mxu0 %v2831_v13  ;;  %2038 = vmatprep.subr.bf16.mxu1 %v2833_v14  ;;  %v2863_v34 = vld [vmem:[%s3583_s27 + $0x10c] ss:$16 sps:$4 sm:$0xff]   ;;  %v2865_v35 = vld [vmem:[%s3583_s27 + $0x100] ss:$16 sps:$4 sm:$0xff]   ;;  %v2866_v36 = vld [vmem:[%s3583_s27 + $0x108] ss:$16 sps:$4 sm:$0xff]  }
  0x8a   : > { %v2867_v37 = vld [vmem:[%s3583_s27 + $0x124] ss:$16 sps:$4 sm:$0xff]   ;;  %v2869_v38 = vld [vmem:[%s3583_s27 + $0x12c] ss:$16 sps:$4 sm:$0xff]   ;;  %v2871_v39 = vld [vmem:[%s3583_s27 + $0x120] ss:$16 sps:$4 sm:$0xff]  }
  0x8b   : > { %v2872_v40 = vld [vmem:[%s3583_s27 + $0x128] ss:$16 sps:$4 sm:$0xff]   ;;  %v2873_v41 = vld [vmem:[%s3583_s27 + $0x144] ss:$16 sps:$4 sm:$0xff]   ;;  %v2875_v42 = vld [vmem:[%s3583_s27 + $0x14c] ss:$16 sps:$4 sm:$0xff]  }
  0x8c   : > { %1867 = vmatpush1.bf16.msra.mxu0 %v2835_v15  ;;  %2039 = vmatpush1.bf16.msra.mxu1 %v2836_v16  ;;  %v2877_v43 = vld [vmem:[%s3583_s27 + $0x140] ss:$16 sps:$4 sm:$0xff]   ;;  %v2878_v44 = vld [vmem:[%s3583_s27 + $0x148] ss:$16 sps:$4 sm:$0xff]   ;;  %v2879_v45 = vld [vmem:[%s3583_s27 + $0x164] ss:$16 sps:$4 sm:$0xff]  }
  0x8d   : > { %1868 = vmatprep.subr.bf16.mxu0 %v2837_v17  ;;  %2040 = vmatprep.subr.bf16.mxu1 %v2839_v18  ;;  %v2881_v46 = vld [vmem:[%s3583_s27 + $0x16c] ss:$16 sps:$4 sm:$0xff]   ;;  %v276_v47 = vld [vmem:[%s3576_s24] sm:$0xff]  ;;  %v2884_v50 = vld [vmem:[%s3583_s27 + $0x168] ss:$16 sps:$4 sm:$0xff]   ;;  %p2687_p6 = scmp.ne.s32.totalorder %s3365_s15, 1 }
  0x8e   : > { %v280_v48 = vld [vmem:[%s3576_s24 + $0x20] sm:$0xff]  ;;  %v2887_v53 = vld [vmem:[%s3583_s27 + $0x18c] ss:$16 sps:$4 sm:$0xff]   ;;  %v2890_v55 = vld [vmem:[%s3583_s27 + $0x188] ss:$16 sps:$4 sm:$0xff]  }
  0x8f   : > { %v2883_v49 = vld [vmem:[%s3583_s27 + $0x160] ss:$16 sps:$4 sm:$0xff]   ;;  %v2424_v51 = vcombine.high %v276_v47, %v280_v48  ;;  %v2885_v52 = vld [vmem:[%s3583_s27 + $0x184] ss:$16 sps:$4 sm:$0xff]   ;;  %v2893_v57 = vld [vmem:[%s3583_s27 + $0x1ac] ss:$16 sps:$4 sm:$0xff]   ;;  %v2423_v6 = vcombine.low %v276_v47, %v280_v48 }
  0x90   : > { %1869 = vmatpush1.bf16.msra.mxu0 %v2841_v19  ;;  %2041 = vmatpush1.bf16.msra.mxu1 %v2842_v20  ;;  %v2889_v54 = vld [vmem:[%s3583_s27 + $0x180] ss:$16 sps:$4 sm:$0xff]   ;;  %v2891_v56 = vld [vmem:[%s3583_s27 + $0x1a4] ss:$16 sps:$4 sm:$0xff]   ;;  %v2896_v59 = vld [vmem:[%s3583_s27 + $0x1a8] ss:$16 sps:$4 sm:$0xff]  }
  0x91   : > { %1870 = vmatprep.subr.bf16.mxu0 %v2843_v21  ;;  %2042 = vmatprep.subr.bf16.mxu1 %v2845_v22  ;;  %v2895_v58 = vld [vmem:[%s3583_s27 + $0x1a0] ss:$16 sps:$4 sm:$0xff]   ;;  %v2897_v60 = vld [vmem:[%s3583_s27 + $0x1c4] ss:$16 sps:$4 sm:$0xff]   ;;  %v2899_v61 = vld [vmem:[%s3583_s27 + $0x1cc] ss:$16 sps:$4 sm:$0xff]  }
  0x92   : > { %1892 = vmatprep.mubr.bf16.mxu0 %v2424_v51  ;;  %2064 = vmatprep.mubr.bf16.mxu1 %v2424_v51  ;;  %v2901_v62 = vld [vmem:[%s3583_s27 + $0x1c0] ss:$16 sps:$4 sm:$0xff]   ;;  %v2902_v63 = vld [vmem:[%s3583_s27 + $0x1c8] ss:$16 sps:$4 sm:$0xff]   ;;  %v2903_v0 = vld [vmem:[%s3583_s27 + $0x1e4] ss:$16 sps:$4 sm:$0xff]  }
  0x93   : > { %v2905_v1 = vld [vmem:[%s3583_s27 + $0x1ec] ss:$16 sps:$4 sm:$0xff]   ;;  %v2907_v2 = vld [vmem:[%s3583_s27 + $0x1e0] ss:$16 sps:$4 sm:$0xff]   ;;  %v2908_v3 = vld [vmem:[%s3583_s27 + $0x1e8] ss:$16 sps:$4 sm:$0xff]  }
  0x94   : > { %1871 = vmatpush1.bf16.msra.mxu0 %v2847_v23  ;;  %2043 = vmatpush1.bf16.msra.mxu1 %v2848_v24  ;;  %v2911_v4 = vld [vmem:[%s3583_s27 + $0x204] ss:$16 sps:$4 sm:$0xff]   ;;  %v2914_v5 = vld [vmem:[%s3583_s27 + $0x20c] ss:$16 sps:$4 sm:$0xff]   ;;  %v2909_v7 = vld [vmem:[%s3583_s27 + $0x200] ss:$16 sps:$4 sm:$0xff]  }
  0x95   : > { %1872 = vmatprep.subr.bf16.mxu0 %v2849_v25  ;;  %2044 = vmatprep.subr.bf16.mxu1 %v2851_v26  ;;  %v2912_v8 = vld [vmem:[%s3583_s27 + $0x208] ss:$16 sps:$4 sm:$0xff]   ;;  %v2917_v9 = vld [vmem:[%s3583_s27 + $0x224] ss:$16 sps:$4 sm:$0xff]   ;;  %v2920_v10 = vld [vmem:[%s3583_s27 + $0x22c] ss:$16 sps:$4 sm:$0xff]  }
  0x96   : > { %v2915_v11 = vld [vmem:[%s3583_s27 + $0x220] ss:$16 sps:$4 sm:$0xff]   ;;  %v2918_v12 = vld [vmem:[%s3583_s27 + $0x228] ss:$16 sps:$4 sm:$0xff]   ;;  %v2923_v13 = vld [vmem:[%s3583_s27 + $0x244] ss:$16 sps:$4 sm:$0xff]  }
  0x97   : > { %v2926_v14 = vld [vmem:[%s3583_s27 + $0x24c] ss:$16 sps:$4 sm:$0xff]   ;;  %v2921_v15 = vld [vmem:[%s3583_s27 + $0x240] ss:$16 sps:$4 sm:$0xff]   ;;  %v2924_v16 = vld [vmem:[%s3583_s27 + $0x248] ss:$16 sps:$4 sm:$0xff]  }
  0x98   : > { %1873 = vmatpush1.bf16.msra.mxu0 %v2853_v27  ;;  %2045 = vmatpush1.bf16.msra.mxu1 %v2854_v28  ;;  %v2929_v17 = vld [vmem:[%s3583_s27 + $0x264] ss:$16 sps:$4 sm:$0xff]   ;;  %v2932_v18 = vld [vmem:[%s3583_s27 + $0x26c] ss:$16 sps:$4 sm:$0xff]   ;;  %v2927_v19 = vld [vmem:[%s3583_s27 + $0x260] ss:$16 sps:$4 sm:$0xff]  }
  0x99   : > { %1874 = vmatprep.subr.bf16.mxu0 %v2855_v29  ;;  %2046 = vmatprep.subr.bf16.mxu1 %v2857_v30  ;;  %v2930_v20 = vld [vmem:[%s3583_s27 + $0x268] ss:$16 sps:$4 sm:$0xff]   ;;  %v2935_v21 = vld [vmem:[%s3583_s27 + $0x284] ss:$16 sps:$4 sm:$0xff]   ;;  %v2938_v22 = vld [vmem:[%s3583_s27 + $0x28c] ss:$16 sps:$4 sm:$0xff]  }
  0x9a   : > { %v2933_v23 = vld [vmem:[%s3583_s27 + $0x280] ss:$16 sps:$4 sm:$0xff]   ;;  %v2936_v24 = vld [vmem:[%s3583_s27 + $0x288] ss:$16 sps:$4 sm:$0xff]   ;;  %v2941_v25 = vld [vmem:[%s3583_s27 + $0x2a4] ss:$16 sps:$4 sm:$0xff]  }
  0x9b   : > { %v2944_v26 = vld [vmem:[%s3583_s27 + $0x2ac] ss:$16 sps:$4 sm:$0xff]   ;;  %v2939_v27 = vld [vmem:[%s3583_s27 + $0x2a0] ss:$16 sps:$4 sm:$0xff]   ;;  %v2942_v28 = vld [vmem:[%s3583_s27 + $0x2a8] ss:$16 sps:$4 sm:$0xff]  }
  0x9c   : > { %1875 = vmatpush1.bf16.msra.mxu0 %v2859_v31  ;;  %2047 = vmatpush1.bf16.msra.mxu1 %v2860_v32  ;;  %v2947_v29 = vld [vmem:[%s3583_s27 + $0x2c4] ss:$16 sps:$4 sm:$0xff]   ;;  %v2950_v30 = vld [vmem:[%s3583_s27 + $0x2cc] ss:$16 sps:$4 sm:$0xff]   ;;  %v2966_v47 = vld [vmem:[%s3583_s27 + $0x328] ss:$16 sps:$4 sm:$0xff]  }
  0x9d   : > { %1876 = vmatprep.subr.bf16.mxu0 %v2861_v33  ;;  %2048 = vmatprep.subr.bf16.mxu1 %v2863_v34  ;;  %v3687_v31 = vld [vmem:[%s3576_s24 + $0x8] sm:$0xff]  ;;  %v2945_v33 = vld [vmem:[%s3583_s27 + $0x2c0] ss:$16 sps:$4 sm:$0xff]   ;;  %v2971_v48 = vld [vmem:[%s3583_s27 + $0x344] ss:$16 sps:$4 sm:$0xff]  }
  0x9e   : > { %v3690_v32 = vld [vmem:[%s3576_s24 + $0x28] sm:$0xff] }
  0x9f   : > { %v2948_v34 = vld [vmem:[%s3583_s27 + $0x2c8] ss:$16 sps:$4 sm:$0xff]  }
  0xa0   : > { %1877 = vmatpush1.bf16.msra.mxu0 %v2865_v35  ;;  %2049 = vmatpush1.bf16.msra.mxu1 %v2866_v36  ;;  %v2426_v35 = vcombine.high %v3687_v31, %v3690_v32  ;;  %v2953_v36 = vld [vmem:[%s3583_s27 + $0x2e4] ss:$16 sps:$4 sm:$0xff]   ;;  %v2972_v51 = vld [vmem:[%s3583_s27 + $0x348] ss:$16 sps:$4 sm:$0xff]  }
  0xa1   : > { %1878 = vmatprep.subr.bf16.mxu0 %v2867_v37  ;;  %2050 = vmatprep.subr.bf16.mxu1 %v2869_v38  ;;  %v2956_v37 = vld [vmem:[%s3583_s27 + $0x2ec] ss:$16 sps:$4 sm:$0xff]   ;;  %v2951_v38 = vld [vmem:[%s3583_s27 + $0x2e0] ss:$16 sps:$4 sm:$0xff]  }
  0xa4   : > { %1879 = vmatpush1.bf16.msra.mxu0 %v2871_v39  ;;  %2051 = vmatpush1.bf16.msra.mxu1 %v2872_v40  ;;  %v2954_v39 = vld [vmem:[%s3583_s27 + $0x2e8] ss:$16 sps:$4 sm:$0xff]   ;;  %v2959_v40 = vld [vmem:[%s3583_s27 + $0x304] ss:$16 sps:$4 sm:$0xff]  }
  0xa5   : > { %1880 = vmatprep.subr.bf16.mxu0 %v2873_v41  ;;  %2052 = vmatprep.subr.bf16.mxu1 %v2875_v42  ;;  %v2962_v41 = vld [vmem:[%s3583_s27 + $0x30c] ss:$16 sps:$4 sm:$0xff]   ;;  %v2957_v42 = vld [vmem:[%s3583_s27 + $0x300] ss:$16 sps:$4 sm:$0xff]  }
  0xa8   : > { %1881 = vmatpush1.bf16.msra.mxu0 %v2877_v43  ;;  %2053 = vmatpush1.bf16.msra.mxu1 %v2878_v44  ;;  %v2960_v43 = vld [vmem:[%s3583_s27 + $0x308] ss:$16 sps:$4 sm:$0xff]   ;;  %v2965_v44 = vld [vmem:[%s3583_s27 + $0x324] ss:$16 sps:$4 sm:$0xff]  }
  0xa9   : > { %1882 = vmatprep.subr.bf16.mxu0 %v2879_v45  ;;  %2054 = vmatprep.subr.bf16.mxu1 %v2881_v46  ;;  %v2968_v45 = vld [vmem:[%s3583_s27 + $0x32c] ss:$16 sps:$4 sm:$0xff]   ;;  %v2963_v46 = vld [vmem:[%s3583_s27 + $0x320] ss:$16 sps:$4 sm:$0xff]  }
  0xac   : > { %1883 = vmatpush1.bf16.msra.mxu0 %v2883_v49  ;;  %2055 = vmatpush1.bf16.msra.mxu1 %v2884_v50  ;;  %v2974_v49 = vld [vmem:[%s3583_s27 + $0x34c] ss:$16 sps:$4 sm:$0xff]   ;;  %v2969_v50 = vld [vmem:[%s3583_s27 + $0x340] ss:$16 sps:$4 sm:$0xff]  }
  0xad   : > { %1884 = vmatprep.subr.bf16.mxu0 %v2885_v52  ;;  %2056 = vmatprep.subr.bf16.mxu1 %v2887_v53  ;;  %v2977_v52 = vld [vmem:[%s3583_s27 + $0x364] ss:$16 sps:$4 sm:$0xff]   ;;  %v2980_v53 = vld [vmem:[%s3583_s27 + $0x36c] ss:$16 sps:$4 sm:$0xff]  }
  0xb0   : > { %1885 = vmatpush1.bf16.msra.mxu0 %v2889_v54  ;;  %2057 = vmatpush1.bf16.msra.mxu1 %v2890_v55  ;;  %v2975_v54 = vld [vmem:[%s3583_s27 + $0x360] ss:$16 sps:$4 sm:$0xff]   ;;  %v2978_v55 = vld [vmem:[%s3583_s27 + $0x368] ss:$16 sps:$4 sm:$0xff]  }
  0xb1   : > { %1886 = vmatprep.subr.bf16.mxu0 %v2891_v56  ;;  %2058 = vmatprep.subr.bf16.mxu1 %v2893_v57  ;;  %v2983_v56 = vld [vmem:[%s3583_s27 + $0x384] ss:$16 sps:$4 sm:$0xff]   ;;  %v2986_v57 = vld [vmem:[%s3583_s27 + $0x38c] ss:$16 sps:$4 sm:$0xff]  }
  0xb4   : > { %1887 = vmatpush1.bf16.msra.mxu0 %v2895_v58  ;;  %2059 = vmatpush1.bf16.msra.mxu1 %v2896_v59  ;;  %v2981_v58 = vld [vmem:[%s3583_s27 + $0x380] ss:$16 sps:$4 sm:$0xff]   ;;  %v2984_v59 = vld [vmem:[%s3583_s27 + $0x388] ss:$16 sps:$4 sm:$0xff]  }
  0xb5   : > { %1888 = vmatprep.subr.bf16.mxu0 %v2897_v60  ;;  %2060 = vmatprep.subr.bf16.mxu1 %v2899_v61  ;;  %v2989_v60 = vld [vmem:[%s3583_s27 + $0x3a4] ss:$16 sps:$4 sm:$0xff]   ;;  %v2992_v61 = vld [vmem:[%s3583_s27 + $0x3ac] ss:$16 sps:$4 sm:$0xff]  }
  0xb8   : > { %1889 = vmatpush1.bf16.msra.mxu0 %v2901_v62  ;;  %2061 = vmatpush1.bf16.msra.mxu1 %v2902_v63  ;;  %v2987_v62 = vld [vmem:[%s3583_s27 + $0x3a0] ss:$16 sps:$4 sm:$0xff]   ;;  %v2990_v63 = vld [vmem:[%s3583_s27 + $0x3a8] ss:$16 sps:$4 sm:$0xff]  }
  0xb9   : > { %1890 = vmatprep.subr.bf16.mxu0 %v2903_v0  ;;  %2062 = vmatprep.subr.bf16.mxu1 %v2905_v1  ;;  %v2995_v0 = vld [vmem:[%s3583_s27 + $0x3c4] ss:$16 sps:$4 sm:$0xff]   ;;  %v2998_v1 = vld [vmem:[%s3583_s27 + $0x3cc] ss:$16 sps:$4 sm:$0xff]  }
  0xbc   : > { %1891 = vmatpush1.bf16.msra.mxu0 %v2907_v2  ;;  %2063 = vmatpush1.bf16.msra.mxu1 %v2908_v3  ;;  %v2993_v2 = vld [vmem:[%s3583_s27 + $0x3c0] ss:$16 sps:$4 sm:$0xff]   ;;  %v2996_v3 = vld [vmem:[%s3583_s27 + $0x3c8] ss:$16 sps:$4 sm:$0xff]  }
  0xbd   : > { %1903 = vmatprep.subr.bf16.mxu0 %v2911_v4  ;;  %2075 = vmatprep.subr.bf16.mxu1 %v2914_v5  ;;  %v3001_v4 = vld [vmem:[%s3583_s27 + $0x3e4] ss:$16 sps:$4 sm:$0xff]   ;;  %v3004_v5 = vld [vmem:[%s3583_s27 + $0x3ec] ss:$16 sps:$4 sm:$0xff]  }
  0xbf   : > { %1893 = vmatmul.mubr.bf16.vlgmr.msra.gmra.mrb[0].mxu0 %v2423_v6  ;;  %2065 = vmatmul.mubr.bf16.vlgmr.msra.gmra.mrb[0].mxu1 %v2423_v6  ;;  %v2999_v6 = vld [vmem:[%s3583_s27 + $0x3e0] ss:$16 sps:$4 sm:$0xff]  }
  0xc0   : > { %1904 = vmatpush1.bf16.msra.mxu0 %v2909_v7  ;;  %2076 = vmatpush1.bf16.msra.mxu1 %v2912_v8  ;;  %v3002_v7 = vld [vmem:[%s3583_s27 + $0x3e8] ss:$16 sps:$4 sm:$0xff]   ;;  %v3007_v8 = vld [vmem:[%s3583_s27 + $0x404] ss:$16 sps:$4 sm:$0xff]  }
  0xc1   : > { %1905 = vmatprep.subr.bf16.mxu0 %v2917_v9  ;;  %2077 = vmatprep.subr.bf16.mxu1 %v2920_v10  ;;  %v3010_v9 = vld [vmem:[%s3583_s27 + $0x40c] ss:$16 sps:$4 sm:$0xff]   ;;  %v2425_v10 = vcombine.low %v3687_v31, %v3690_v32  ;;  %v3032_v31 = vld [vmem:[%s3583_s27 + $0x488] ss:$16 sps:$4 sm:$0xff]   ;;  %v3037_v32 = vld [vmem:[%s3583_s27 + $0x4a4] ss:$16 sps:$4 sm:$0xff]  }
  0xc2   : > { %1935 = vmatprep.mubr.bf16.mxu0 %v2426_v35  ;;  %2107 = vmatprep.mubr.bf16.mxu1 %v2426_v35  ;;  %v3038_v35 = vld [vmem:[%s3583_s27 + $0x4a8] ss:$16 sps:$4 sm:$0xff]  }
  0xc4   : > { %1906 = vmatpush1.bf16.msra.mxu0 %v2915_v11  ;;  %2078 = vmatpush1.bf16.msra.mxu1 %v2918_v12  ;;  %v3005_v11 = vld [vmem:[%s3583_s27 + $0x400] ss:$16 sps:$4 sm:$0xff]   ;;  %v3008_v12 = vld [vmem:[%s3583_s27 + $0x408] ss:$16 sps:$4 sm:$0xff]  }
  0xc5   : > { %1907 = vmatprep.subr.bf16.mxu0 %v2923_v13  ;;  %2079 = vmatprep.subr.bf16.mxu1 %v2926_v14  ;;  %v3013_v13 = vld [vmem:[%s3583_s27 + $0x424] ss:$16 sps:$4 sm:$0xff]   ;;  %v3016_v14 = vld [vmem:[%s3583_s27 + $0x42c] ss:$16 sps:$4 sm:$0xff]  }
  0xc8   : > { %1908 = vmatpush1.bf16.msra.mxu0 %v2921_v15  ;;  %2080 = vmatpush1.bf16.msra.mxu1 %v2924_v16  ;;  %v3741_v15 = vld [vmem:[%s3576_s24 + $0x10] sm:$0xff] }
  0xc9   : > { %1909 = vmatprep.subr.bf16.mxu0 %v2929_v17  ;;  %2081 = vmatprep.subr.bf16.mxu1 %v2932_v18  ;;  %v3744_v16 = vld [vmem:[%s3576_s24 + $0x30] sm:$0xff] }
  0xca   : > { %v2428_v17 = vcombine.high %v3741_v15, %v3744_v16  ;;  %v3011_v18 = vld [vmem:[%s3583_s27 + $0x420] ss:$16 sps:$4 sm:$0xff]  }
  0xcc   : > { %1910 = vmatpush1.bf16.msra.mxu0 %v2927_v19  ;;  %2082 = vmatpush1.bf16.msra.mxu1 %v2930_v20  ;;  %v3014_v19 = vld [vmem:[%s3583_s27 + $0x428] ss:$16 sps:$4 sm:$0xff]   ;;  %v3019_v20 = vld [vmem:[%s3583_s27 + $0x444] ss:$16 sps:$4 sm:$0xff]  }
  0xcd   : > { %1911 = vmatprep.subr.bf16.mxu0 %v2935_v21  ;;  %2083 = vmatprep.subr.bf16.mxu1 %v2938_v22  ;;  %v3022_v21 = vld [vmem:[%s3583_s27 + $0x44c] ss:$16 sps:$4 sm:$0xff]   ;;  %v3017_v22 = vld [vmem:[%s3583_s27 + $0x440] ss:$16 sps:$4 sm:$0xff]  }
  0xd0   : > { %1912 = vmatpush1.bf16.msra.mxu0 %v2933_v23  ;;  %2084 = vmatpush1.bf16.msra.mxu1 %v2936_v24  ;;  %v3020_v23 = vld [vmem:[%s3583_s27 + $0x448] ss:$16 sps:$4 sm:$0xff]   ;;  %v3025_v24 = vld [vmem:[%s3583_s27 + $0x464] ss:$16 sps:$4 sm:$0xff]  }
  0xd1   : > { %1913 = vmatprep.subr.bf16.mxu0 %v2941_v25  ;;  %2085 = vmatprep.subr.bf16.mxu1 %v2944_v26  ;;  %v3028_v25 = vld [vmem:[%s3583_s27 + $0x46c] ss:$16 sps:$4 sm:$0xff]   ;;  %v3023_v26 = vld [vmem:[%s3583_s27 + $0x460] ss:$16 sps:$4 sm:$0xff]  }
  0xd4   : > { %1914 = vmatpush1.bf16.msra.mxu0 %v2939_v27  ;;  %2086 = vmatpush1.bf16.msra.mxu1 %v2942_v28  ;;  %v3026_v27 = vld [vmem:[%s3583_s27 + $0x468] ss:$16 sps:$4 sm:$0xff]   ;;  %v3031_v28 = vld [vmem:[%s3583_s27 + $0x484] ss:$16 sps:$4 sm:$0xff]  }
  0xd5   : > { %1915 = vmatprep.subr.bf16.mxu0 %v2947_v29  ;;  %2087 = vmatprep.subr.bf16.mxu1 %v2950_v30  ;;  %v3034_v29 = vld [vmem:[%s3583_s27 + $0x48c] ss:$16 sps:$4 sm:$0xff]   ;;  %v3029_v30 = vld [vmem:[%s3583_s27 + $0x480] ss:$16 sps:$4 sm:$0xff]  }
  0xd8   : > { %1916 = vmatpush1.bf16.msra.mxu0 %v2945_v33  ;;  %2088 = vmatpush1.bf16.msra.mxu1 %v2948_v34  ;;  %v3040_v33 = vld [vmem:[%s3583_s27 + $0x4ac] ss:$16 sps:$4 sm:$0xff]   ;;  %v3035_v34 = vld [vmem:[%s3583_s27 + $0x4a0] ss:$16 sps:$4 sm:$0xff]  }
  0xd9   : > { %1917 = vmatprep.subr.bf16.mxu0 %v2953_v36  ;;  %2089 = vmatprep.subr.bf16.mxu1 %v2956_v37  ;;  %v3043_v36 = vld [vmem:[%s3583_s27 + $0x4c4] ss:$16 sps:$4 sm:$0xff]   ;;  %v3046_v37 = vld [vmem:[%s3583_s27 + $0x4cc] ss:$16 sps:$4 sm:$0xff]  }
  0xdc   : > { %1918 = vmatpush1.bf16.msra.mxu0 %v2951_v38  ;;  %2090 = vmatpush1.bf16.msra.mxu1 %v2954_v39  ;;  %v3041_v38 = vld [vmem:[%s3583_s27 + $0x4c0] ss:$16 sps:$4 sm:$0xff]   ;;  %v3044_v39 = vld [vmem:[%s3583_s27 + $0x4c8] ss:$16 sps:$4 sm:$0xff]  }
  0xdd   : > { %1919 = vmatprep.subr.bf16.mxu0 %v2959_v40  ;;  %2091 = vmatprep.subr.bf16.mxu1 %v2962_v41  ;;  %v3049_v40 = vld [vmem:[%s3583_s27 + $0x4e4] ss:$16 sps:$4 sm:$0xff]   ;;  %v3052_v41 = vld [vmem:[%s3583_s27 + $0x4ec] ss:$16 sps:$4 sm:$0xff]  }
  0xe0   : > { %1920 = vmatpush1.bf16.msra.mxu0 %v2957_v42  ;;  %2092 = vmatpush1.bf16.msra.mxu1 %v2960_v43  ;;  %v3047_v42 = vld [vmem:[%s3583_s27 + $0x4e0] ss:$16 sps:$4 sm:$0xff]   ;;  %v3050_v43 = vld [vmem:[%s3583_s27 + $0x4e8] ss:$16 sps:$4 sm:$0xff]  }
  0xe1   : > { %1921 = vmatprep.subr.bf16.mxu0 %v2965_v44  ;;  %2093 = vmatprep.subr.bf16.mxu1 %v2968_v45  ;;  %v3055_v44 = vld [vmem:[%s3583_s27 + $0x504] ss:$16 sps:$4 sm:$0xff]   ;;  %v3058_v45 = vld [vmem:[%s3583_s27 + $0x50c] ss:$16 sps:$4 sm:$0xff]  }
  0xe4   : > { %1922 = vmatpush1.bf16.msra.mxu0 %v2963_v46  ;;  %2094 = vmatpush1.bf16.msra.mxu1 %v2966_v47  ;;  %v3053_v46 = vld [vmem:[%s3583_s27 + $0x500] ss:$16 sps:$4 sm:$0xff]   ;;  %v3056_v47 = vld [vmem:[%s3583_s27 + $0x508] ss:$16 sps:$4 sm:$0xff]  }
  0xe5   : > { %1923 = vmatprep.subr.bf16.mxu0 %v2971_v48  ;;  %2095 = vmatprep.subr.bf16.mxu1 %v2974_v49  ;;  %v3061_v48 = vld [vmem:[%s3583_s27 + $0x524] ss:$16 sps:$4 sm:$0xff]   ;;  %v3064_v49 = vld [vmem:[%s3583_s27 + $0x52c] ss:$16 sps:$4 sm:$0xff]  }
  0xe8   : > { %1924 = vmatpush1.bf16.msra.mxu0 %v2969_v50  ;;  %2096 = vmatpush1.bf16.msra.mxu1 %v2972_v51  ;;  %v3059_v50 = vld [vmem:[%s3583_s27 + $0x520] ss:$16 sps:$4 sm:$0xff]   ;;  %v3062_v51 = vld [vmem:[%s3583_s27 + $0x528] ss:$16 sps:$4 sm:$0xff]  }
  0xe9   : > { %1925 = vmatprep.subr.bf16.mxu0 %v2977_v52  ;;  %2097 = vmatprep.subr.bf16.mxu1 %v2980_v53  ;;  %v3067_v52 = vld [vmem:[%s3583_s27 + $0x544] ss:$16 sps:$4 sm:$0xff]   ;;  %v3070_v53 = vld [vmem:[%s3583_s27 + $0x54c] ss:$16 sps:$4 sm:$0xff]  }
  0xec   : > { %1926 = vmatpush1.bf16.msra.mxu0 %v2975_v54  ;;  %2098 = vmatpush1.bf16.msra.mxu1 %v2978_v55  ;;  %v3065_v54 = vld [vmem:[%s3583_s27 + $0x540] ss:$16 sps:$4 sm:$0xff]   ;;  %v3068_v55 = vld [vmem:[%s3583_s27 + $0x548] ss:$16 sps:$4 sm:$0xff]  }
  0xed   : > { %1927 = vmatprep.subr.bf16.mxu0 %v2983_v56  ;;  %2099 = vmatprep.subr.bf16.mxu1 %v2986_v57  ;;  %v3073_v56 = vld [vmem:[%s3583_s27 + $0x564] ss:$16 sps:$4 sm:$0xff]   ;;  %v3076_v57 = vld [vmem:[%s3583_s27 + $0x56c] ss:$16 sps:$4 sm:$0xff]  }
  0xf0   : > { %1928 = vmatpush1.bf16.msra.mxu0 %v2981_v58  ;;  %2100 = vmatpush1.bf16.msra.mxu1 %v2984_v59  ;;  %v3071_v58 = vld [vmem:[%s3583_s27 + $0x560] ss:$16 sps:$4 sm:$0xff]   ;;  %v3074_v59 = vld [vmem:[%s3583_s27 + $0x568] ss:$16 sps:$4 sm:$0xff]  }
  0xf1   : > { %1929 = vmatprep.subr.bf16.mxu0 %v2989_v60  ;;  %2101 = vmatprep.subr.bf16.mxu1 %v2992_v61  ;;  %v3079_v60 = vld [vmem:[%s3583_s27 + $0x584] ss:$16 sps:$4 sm:$0xff]   ;;  %v3082_v61 = vld [vmem:[%s3583_s27 + $0x58c] ss:$16 sps:$4 sm:$0xff]  }
  0xf4   : > { %1930 = vmatpush1.bf16.msra.mxu0 %v2987_v62  ;;  %2102 = vmatpush1.bf16.msra.mxu1 %v2990_v63  ;;  %v3077_v62 = vld [vmem:[%s3583_s27 + $0x580] ss:$16 sps:$4 sm:$0xff]   ;;  %v3080_v63 = vld [vmem:[%s3583_s27 + $0x588] ss:$16 sps:$4 sm:$0xff]  }
  0xf5   : > { %1931 = vmatprep.subr.bf16.mxu0 %v2995_v0  ;;  %2103 = vmatprep.subr.bf16.mxu1 %v2998_v1  ;;  %v3085_v0 = vld [vmem:[%s3583_s27 + $0x5a4] ss:$16 sps:$4 sm:$0xff]   ;;  %v3088_v1 = vld [vmem:[%s3583_s27 + $0x5ac] ss:$16 sps:$4 sm:$0xff]  }
  0xf8   : > { %1932 = vmatpush1.bf16.msra.mxu0 %v2993_v2  ;;  %2104 = vmatpush1.bf16.msra.mxu1 %v2996_v3  ;;  %v3083_v2 = vld [vmem:[%s3583_s27 + $0x5a0] ss:$16 sps:$4 sm:$0xff]   ;;  %v3086_v3 = vld [vmem:[%s3583_s27 + $0x5a8] ss:$16 sps:$4 sm:$0xff]  }
  0xf9   : > { %1933 = vmatprep.subr.bf16.mxu0 %v3001_v4  ;;  %2105 = vmatprep.subr.bf16.mxu1 %v3004_v5  ;;  %v3091_v4 = vld [vmem:[%s3583_s27 + $0x5c4] ss:$16 sps:$4 sm:$0xff]   ;;  %v3094_v5 = vld [vmem:[%s3583_s27 + $0x5cc] ss:$16 sps:$4 sm:$0xff]  }
  0xfc   : > { %1934 = vmatpush1.bf16.msra.mxu0 %v2999_v6  ;;  %2106 = vmatpush1.bf16.msra.mxu1 %v3002_v7  ;;  %v3089_v6 = vld [vmem:[%s3583_s27 + $0x5c0] ss:$16 sps:$4 sm:$0xff]   ;;  %v3092_v7 = vld [vmem:[%s3583_s27 + $0x5c8] ss:$16 sps:$4 sm:$0xff]  }
  0xfd   : > { %1946 = vmatprep.subr.bf16.mxu0 %v3007_v8  ;;  %2118 = vmatprep.subr.bf16.mxu1 %v3010_v9  ;;  %v3097_v8 = vld [vmem:[%s3583_s27 + $0x5e4] ss:$16 sps:$4 sm:$0xff]   ;;  %v3100_v9 = vld [vmem:[%s3583_s27 + $0x5ec] ss:$16 sps:$4 sm:$0xff]  }
  0xff   : > { %1936 = vmatmul.mubr.bf16.vlgmr.msra.gmra.mrb[0].mxu0 %v2425_v10  ;;  %2108 = vmatmul.mubr.bf16.vlgmr.msra.gmra.mrb[0].mxu1 %v2425_v10  ;;  %v3095_v10 = vld [vmem:[%s3583_s27 + $0x5e0] ss:$16 sps:$4 sm:$0xff]  }
 0x100   : > { %1947 = vmatpush1.bf16.msra.mxu0 %v3005_v11  ;;  %2119 = vmatpush1.bf16.msra.mxu1 %v3008_v12  ;;  %v3098_v11 = vld [vmem:[%s3583_s27 + $0x5e8] ss:$16 sps:$4 sm:$0xff]   ;;  %v3103_v12 = vld [vmem:[%s3583_s27 + $0x604] ss:$16 sps:$4 sm:$0xff]  }
 0x101   : > { %1948 = vmatprep.subr.bf16.mxu0 %v3013_v13  ;;  %2120 = vmatprep.subr.bf16.mxu1 %v3016_v14  ;;  %v3106_v13 = vld [vmem:[%s3583_s27 + $0x60c] ss:$16 sps:$4 sm:$0xff]   ;;  %v2427_v14 = vcombine.low %v3741_v15, %v3744_v16  ;;  %v3107_v16 = vld [vmem:[%s3583_s27 + $0x620] ss:$16 sps:$4 sm:$0xff]  }
 0x102   : > { %1978 = vmatprep.mubr.bf16.mxu0 %v2428_v17  ;;  %2150 = vmatprep.mubr.bf16.mxu1 %v2428_v17  ;;  %v3811_v17 = vld [vmem:[%s3576_s24 + $0x18] sm:$0xff] }
 0x104   : > { %1949 = vmatpush1.bf16.msra.mxu0 %v3011_v18  ;;  %2121 = vmatpush1.bf16.msra.mxu1 %v3014_v19  ;;  %v3814_v18 = vld [vmem:[%s3576_s24 + $0x38] sm:$0xff]  ;;  %v3101_v19 = vld [vmem:[%s3583_s27 + $0x600] ss:$16 sps:$4 sm:$0xff]  }
 0x105   : > { %1950 = vmatprep.subr.bf16.mxu0 %v3019_v20  ;;  %2122 = vmatprep.subr.bf16.mxu1 %v3022_v21  ;;  %v3104_v20 = vld [vmem:[%s3583_s27 + $0x608] ss:$16 sps:$4 sm:$0xff]   ;;  %v3109_v21 = vld [vmem:[%s3583_s27 + $0x624] ss:$16 sps:$4 sm:$0xff]   ;;  %v2430_v15 = vcombine.high %v3811_v17, %v3814_v18 }
 0x108   : > { %1951 = vmatpush1.bf16.msra.mxu0 %v3017_v22  ;;  %2123 = vmatpush1.bf16.msra.mxu1 %v3020_v23  ;;  %v3112_v22 = vld [vmem:[%s3583_s27 + $0x62c] ss:$16 sps:$4 sm:$0xff]   ;;  %v3110_v23 = vld [vmem:[%s3583_s27 + $0x628] ss:$16 sps:$4 sm:$0xff]  }
 0x109   : > { %1952 = vmatprep.subr.bf16.mxu0 %v3025_v24  ;;  %2124 = vmatprep.subr.bf16.mxu1 %v3028_v25  ;;  %v3115_v24 = vld [vmem:[%s3583_s27 + $0x644] ss:$16 sps:$4 sm:$0xff]   ;;  %v3118_v25 = vld [vmem:[%s3583_s27 + $0x64c] ss:$16 sps:$4 sm:$0xff]  }
 0x10c   : > { %1953 = vmatpush1.bf16.msra.mxu0 %v3023_v26  ;;  %2125 = vmatpush1.bf16.msra.mxu1 %v3026_v27  ;;  %v3113_v26 = vld [vmem:[%s3583_s27 + $0x640] ss:$16 sps:$4 sm:$0xff]   ;;  %v3116_v27 = vld [vmem:[%s3583_s27 + $0x648] ss:$16 sps:$4 sm:$0xff]  }
 0x10d   : > { %1954 = vmatprep.subr.bf16.mxu0 %v3031_v28  ;;  %2126 = vmatprep.subr.bf16.mxu1 %v3034_v29  ;;  %v3121_v28 = vld [vmem:[%s3583_s27 + $0x664] ss:$16 sps:$4 sm:$0xff]   ;;  %v3124_v29 = vld [vmem:[%s3583_s27 + $0x66c] ss:$16 sps:$4 sm:$0xff]  }
 0x110   : > { %1955 = vmatpush1.bf16.msra.mxu0 %v3029_v30  ;;  %2127 = vmatpush1.bf16.msra.mxu1 %v3032_v31  ;;  %v3119_v30 = vld [vmem:[%s3583_s27 + $0x660] ss:$16 sps:$4 sm:$0xff]   ;;  %v3122_v31 = vld [vmem:[%s3583_s27 + $0x668] ss:$16 sps:$4 sm:$0xff]  }
 0x111   : > { %1956 = vmatprep.subr.bf16.mxu0 %v3037_v32  ;;  %2128 = vmatprep.subr.bf16.mxu1 %v3040_v33  ;;  %v3127_v32 = vld [vmem:[%s3583_s27 + $0x684] ss:$16 sps:$4 sm:$0xff]   ;;  %v3130_v33 = vld [vmem:[%s3583_s27 + $0x68c] ss:$16 sps:$4 sm:$0xff]  }
 0x114   : > { %1957 = vmatpush1.bf16.msra.mxu0 %v3035_v34  ;;  %2129 = vmatpush1.bf16.msra.mxu1 %v3038_v35  ;;  %v3125_v34 = vld [vmem:[%s3583_s27 + $0x680] ss:$16 sps:$4 sm:$0xff]   ;;  %v3128_v35 = vld [vmem:[%s3583_s27 + $0x688] ss:$16 sps:$4 sm:$0xff]  }
 0x115   : > { %1958 = vmatprep.subr.bf16.mxu0 %v3043_v36  ;;  %2130 = vmatprep.subr.bf16.mxu1 %v3046_v37  ;;  %v3133_v36 = vld [vmem:[%s3583_s27 + $0x6a4] ss:$16 sps:$4 sm:$0xff]   ;;  %v3136_v37 = vld [vmem:[%s3583_s27 + $0x6ac] ss:$16 sps:$4 sm:$0xff]  }
 0x118   : > { %1959 = vmatpush1.bf16.msra.mxu0 %v3041_v38  ;;  %2131 = vmatpush1.bf16.msra.mxu1 %v3044_v39  ;;  %v3131_v38 = vld [vmem:[%s3583_s27 + $0x6a0] ss:$16 sps:$4 sm:$0xff]   ;;  %v3134_v39 = vld [vmem:[%s3583_s27 + $0x6a8] ss:$16 sps:$4 sm:$0xff]  }
 0x119   : > { %1960 = vmatprep.subr.bf16.mxu0 %v3049_v40  ;;  %2132 = vmatprep.subr.bf16.mxu1 %v3052_v41  ;;  %v3139_v40 = vld [vmem:[%s3583_s27 + $0x6c4] ss:$16 sps:$4 sm:$0xff]   ;;  %v3142_v41 = vld [vmem:[%s3583_s27 + $0x6cc] ss:$16 sps:$4 sm:$0xff]  }
 0x11c   : > { %1961 = vmatpush1.bf16.msra.mxu0 %v3047_v42  ;;  %2133 = vmatpush1.bf16.msra.mxu1 %v3050_v43  ;;  %v3137_v42 = vld [vmem:[%s3583_s27 + $0x6c0] ss:$16 sps:$4 sm:$0xff]   ;;  %v3140_v43 = vld [vmem:[%s3583_s27 + $0x6c8] ss:$16 sps:$4 sm:$0xff]  }
 0x11d   : > { %1962 = vmatprep.subr.bf16.mxu0 %v3055_v44  ;;  %2134 = vmatprep.subr.bf16.mxu1 %v3058_v45  ;;  %v3145_v44 = vld [vmem:[%s3583_s27 + $0x6e4] ss:$16 sps:$4 sm:$0xff]   ;;  %v3148_v45 = vld [vmem:[%s3583_s27 + $0x6ec] ss:$16 sps:$4 sm:$0xff]  }
 0x120   : > { %1963 = vmatpush1.bf16.msra.mxu0 %v3053_v46  ;;  %2135 = vmatpush1.bf16.msra.mxu1 %v3056_v47  ;;  %v3143_v46 = vld [vmem:[%s3583_s27 + $0x6e0] ss:$16 sps:$4 sm:$0xff]   ;;  %v3146_v47 = vld [vmem:[%s3583_s27 + $0x6e8] ss:$16 sps:$4 sm:$0xff]  }
 0x121   : > { %1964 = vmatprep.subr.bf16.mxu0 %v3061_v48  ;;  %2136 = vmatprep.subr.bf16.mxu1 %v3064_v49  ;;  %v3151_v48 = vld [vmem:[%s3583_s27 + $0x704] ss:$16 sps:$4 sm:$0xff]   ;;  %v3154_v49 = vld [vmem:[%s3583_s27 + $0x70c] ss:$16 sps:$4 sm:$0xff]  }
 0x124   : > { %1965 = vmatpush1.bf16.msra.mxu0 %v3059_v50  ;;  %2137 = vmatpush1.bf16.msra.mxu1 %v3062_v51  ;;  %v3149_v50 = vld [vmem:[%s3583_s27 + $0x700] ss:$16 sps:$4 sm:$0xff]   ;;  %v3152_v51 = vld [vmem:[%s3583_s27 + $0x708] ss:$16 sps:$4 sm:$0xff]  }
 0x125   : > { %1966 = vmatprep.subr.bf16.mxu0 %v3067_v52  ;;  %2138 = vmatprep.subr.bf16.mxu1 %v3070_v53  ;;  %v3157_v52 = vld [vmem:[%s3583_s27 + $0x724] ss:$16 sps:$4 sm:$0xff]   ;;  %v3160_v53 = vld [vmem:[%s3583_s27 + $0x72c] ss:$16 sps:$4 sm:$0xff]  }
 0x128   : > { %1967 = vmatpush1.bf16.msra.mxu0 %v3065_v54  ;;  %2139 = vmatpush1.bf16.msra.mxu1 %v3068_v55  ;;  %v3155_v54 = vld [vmem:[%s3583_s27 + $0x720] ss:$16 sps:$4 sm:$0xff]   ;;  %v3158_v55 = vld [vmem:[%s3583_s27 + $0x728] ss:$16 sps:$4 sm:$0xff]  }
 0x129   : > { %1968 = vmatprep.subr.bf16.mxu0 %v3073_v56  ;;  %2140 = vmatprep.subr.bf16.mxu1 %v3076_v57  ;;  %v3163_v56 = vld [vmem:[%s3583_s27 + $0x744] ss:$16 sps:$4 sm:$0xff]   ;;  %v3166_v57 = vld [vmem:[%s3583_s27 + $0x74c] ss:$16 sps:$4 sm:$0xff]  }
 0x12c   : > { %1969 = vmatpush1.bf16.msra.mxu0 %v3071_v58  ;;  %2141 = vmatpush1.bf16.msra.mxu1 %v3074_v59  ;;  %v3161_v58 = vld [vmem:[%s3583_s27 + $0x740] ss:$16 sps:$4 sm:$0xff]   ;;  %v3164_v59 = vld [vmem:[%s3583_s27 + $0x748] ss:$16 sps:$4 sm:$0xff]  }
 0x12d   : > { %1970 = vmatprep.subr.bf16.mxu0 %v3079_v60  ;;  %2142 = vmatprep.subr.bf16.mxu1 %v3082_v61  ;;  %v3169_v60 = vld [vmem:[%s3583_s27 + $0x764] ss:$16 sps:$4 sm:$0xff]   ;;  %v3172_v61 = vld [vmem:[%s3583_s27 + $0x76c] ss:$16 sps:$4 sm:$0xff]  }
 0x130   : > { %1971 = vmatpush1.bf16.msra.mxu0 %v3077_v62  ;;  %2143 = vmatpush1.bf16.msra.mxu1 %v3080_v63  ;;  %v3167_v62 = vld [vmem:[%s3583_s27 + $0x760] ss:$16 sps:$4 sm:$0xff]   ;;  %v3170_v63 = vld [vmem:[%s3583_s27 + $0x768] ss:$16 sps:$4 sm:$0xff]  }
 0x131   : > { %1972 = vmatprep.subr.bf16.mxu0 %v3085_v0  ;;  %2144 = vmatprep.subr.bf16.mxu1 %v3088_v1  ;;  %v3175_v0 = vld [vmem:[%s3583_s27 + $0x784] ss:$16 sps:$4 sm:$0xff]   ;;  %v3178_v1 = vld [vmem:[%s3583_s27 + $0x78c] ss:$16 sps:$4 sm:$0xff]  }
 0x134   : > { %1973 = vmatpush1.bf16.msra.mxu0 %v3083_v2  ;;  %2145 = vmatpush1.bf16.msra.mxu1 %v3086_v3  ;;  %v3173_v2 = vld [vmem:[%s3583_s27 + $0x780] ss:$16 sps:$4 sm:$0xff]   ;;  %v3176_v3 = vld [vmem:[%s3583_s27 + $0x788] ss:$16 sps:$4 sm:$0xff]  }
 0x135   : > { %1974 = vmatprep.subr.bf16.mxu0 %v3091_v4  ;;  %2146 = vmatprep.subr.bf16.mxu1 %v3094_v5  ;;  %v3181_v4 = vld [vmem:[%s3583_s27 + $0x7a4] ss:$16 sps:$4 sm:$0xff]   ;;  %v3184_v5 = vld [vmem:[%s3583_s27 + $0x7ac] ss:$16 sps:$4 sm:$0xff]  }
 0x138   : > { %1975 = vmatpush1.bf16.msra.mxu0 %v3089_v6  ;;  %2147 = vmatpush1.bf16.msra.mxu1 %v3092_v7  ;;  %v3179_v6 = vld [vmem:[%s3583_s27 + $0x7a0] ss:$16 sps:$4 sm:$0xff]   ;;  %v3182_v7 = vld [vmem:[%s3583_s27 + $0x7a8] ss:$16 sps:$4 sm:$0xff]  }
 0x139   : > { %1976 = vmatprep.subr.bf16.mxu0 %v3097_v8  ;;  %2148 = vmatprep.subr.bf16.mxu1 %v3100_v9  ;;  %v3187_v8 = vld [vmem:[%s3583_s27 + $0x7c4] ss:$16 sps:$4 sm:$0xff]   ;;  %v3190_v9 = vld [vmem:[%s3583_s27 + $0x7cc] ss:$16 sps:$4 sm:$0xff]  }
 0x13c   : > { %1977 = vmatpush1.bf16.msra.mxu0 %v3095_v10  ;;  %2149 = vmatpush1.bf16.msra.mxu1 %v3098_v11  ;;  %v3185_v10 = vld [vmem:[%s3583_s27 + $0x7c0] ss:$16 sps:$4 sm:$0xff]   ;;  %v3188_v11 = vld [vmem:[%s3583_s27 + $0x7c8] ss:$16 sps:$4 sm:$0xff]  }
 0x13d   : > { %1989 = vmatprep.subr.bf16.mxu0 %v3103_v12  ;;  %2161 = vmatprep.subr.bf16.mxu1 %v3106_v13  ;;  %v3193_v12 = vld [vmem:[%s3583_s27 + $0x7e4] ss:$16 sps:$4 sm:$0xff]   ;;  %v3196_v13 = vld [vmem:[%s3583_s27 + $0x7ec] ss:$16 sps:$4 sm:$0xff]  }
 0x13f   : > { %1979 = vmatmul.mubr.bf16.vlgmr.msra.gmra.mrb[0].mxu0 %v2427_v14  ;;  %2151 = vmatmul.mubr.bf16.vlgmr.msra.gmra.mrb[0].mxu1 %v2427_v14  ;;  %v3191_v14 = vld [vmem:[%s3583_s27 + $0x7e0] ss:$16 sps:$4 sm:$0xff]  }
 0x140   : > { %1990 = vmatpush1.bf16.msra.mxu0 %v3101_v19  ;;  %2162 = vmatpush1.bf16.msra.mxu1 %v3104_v20  ;;  %v3194_v19 = vld [vmem:[%s3583_s27 + $0x7e8] ss:$16 sps:$4 sm:$0xff]   ;;  %v2429_v20 = vcombine.low %v3811_v17, %v3814_v18 }
 0x141   : > { %1991 = vmatprep.subr.bf16.mxu0 %v3109_v21  ;;  %2163 = vmatprep.subr.bf16.mxu1 %v3112_v22  ;;  %v268_v21 = vld [vmem:[#allocation2] sm:$0xff]  ;;  %v270_v22 = vld [vmem:[#allocation2 + $0x10] sm:$0xff] }
 0x142   : > { %2021 = vmatprep.mubr.bf16.mxu0 %v2430_v15  ;;  %2193 = vmatprep.mubr.bf16.mxu1 %v2430_v15  ;;  %v269_v15 = vld [vmem:[#allocation2 + $0x8] sm:$0xff] }
 0x144   : > { %1992 = vmatpush1.bf16.msra.mxu0 %v3107_v16  ;;  %2164 = vmatpush1.bf16.msra.mxu1 %v3110_v23  ;;  %v271_v16 = vld [vmem:[#allocation2 + $0x18] sm:$0xff] }
 0x145   : > { %1993 = vmatprep.subr.bf16.mxu0 %v3115_v24  ;;  %2165 = vmatprep.subr.bf16.mxu1 %v3118_v25  ;;  %v272_v25 = vld [vmem:[#allocation2 + $0x20] sm:$0xff] }
 0x148   : > { %1994 = vmatpush1.bf16.msra.mxu0 %v3113_v26  ;;  %2166 = vmatpush1.bf16.msra.mxu1 %v3116_v27  ;;  %v274_v26 = vld [vmem:[#allocation2 + $0x30] sm:$0xff] }
 0x149   : > { %1995 = vmatprep.subr.bf16.mxu0 %v3121_v28  ;;  %2167 = vmatprep.subr.bf16.mxu1 %v3124_v29 }
 0x14c   : > { %1996 = vmatpush1.bf16.msra.mxu0 %v3119_v30  ;;  %2168 = vmatpush1.bf16.msra.mxu1 %v3122_v31  ;;  %v273_v31 = vld [vmem:[#allocation2 + $0x28] sm:$0xff] }
 0x14d   : > { %1997 = vmatprep.subr.bf16.mxu0 %v3127_v32  ;;  %2169 = vmatprep.subr.bf16.mxu1 %v3130_v33  ;;  %v275_v32 = vld [vmem:[#allocation2 + $0x38] sm:$0xff] }
 0x150   : > { %1998 = vmatpush1.bf16.msra.mxu0 %v3125_v34  ;;  %2170 = vmatpush1.bf16.msra.mxu1 %v3128_v35 }
 0x151   : > { %1999 = vmatprep.subr.bf16.mxu0 %v3133_v36  ;;  %2171 = vmatprep.subr.bf16.mxu1 %v3136_v37 }
 0x154   : > { %2000 = vmatpush1.bf16.msra.mxu0 %v3131_v38  ;;  %2172 = vmatpush1.bf16.msra.mxu1 %v3134_v39 }
 0x155   : > { %2001 = vmatprep.subr.bf16.mxu0 %v3139_v40  ;;  %2173 = vmatprep.subr.bf16.mxu1 %v3142_v41  ;;  %v2234_v41 = vlaneseq (!%p2687_p6) }
 0x158   : > { %2002 = vmatpush1.bf16.msra.mxu0 %v3137_v42  ;;  %2174 = vmatpush1.bf16.msra.mxu1 %v3140_v43  ;;  %v2235_v42 = vshrl.u32 (!%p2687_p6), %v2234_v41, 7  ;;  %v2232_v43 = vld [vmem:[#allocation8] sm:$0xf] (!%p2687_p6) }
 0x159   : > { %2003 = vmatprep.subr.bf16.mxu0 %v3145_v44  ;;  %2175 = vmatprep.subr.bf16.mxu1 %v3148_v45 }
 0x15c   : > { %2004 = vmatpush1.bf16.msra.mxu0 %v3143_v46  ;;  %2176 = vmatpush1.bf16.msra.mxu1 %v3146_v47  ;;  %v2236_v46 = vsub.s32 (!%p2687_p6), 0, %v2235_v42  ;;  %v2240_v47 = vsub.s32 (!%p2687_p6), 1, %v2235_v42 }
 0x15d   : > { %2005 = vmatprep.subr.bf16.mxu0 %v3151_v48  ;;  %2177 = vmatprep.subr.bf16.mxu1 %v3154_v49  ;;  %v2244_v48 = vsub.s32 (!%p2687_p6), 2, %v2235_v42  ;;  %v2248_v49 = vsub.s32 (!%p2687_p6), 3, %v2235_v42 }
 0x160   : > { %2006 = vmatpush1.bf16.msra.mxu0 %v3149_v50  ;;  %2178 = vmatpush1.bf16.msra.mxu1 %v3152_v51 }
 0x161   : > { %2007 = vmatprep.subr.bf16.mxu0 %v3157_v52  ;;  %2179 = vmatprep.subr.bf16.mxu1 %v3160_v53  ;;  %v2237_v53 = vrot.slane (!%p2687_p6), %v2232_v43, %v2236_v46 }
 0x164   : > { %2008 = vmatpush1.bf16.msra.mxu0 %v3155_v54  ;;  %2180 = vmatpush1.bf16.msra.mxu1 %v3158_v55  ;;  %v2241_v54 = vrot.slane (!%p2687_p6), %v2232_v43, %v2240_v47  ;;  %v2245_v55 = vrot.slane (!%p2687_p6), %v2232_v43, %v2244_v48 }
 0x165   : > { %2009 = vmatprep.subr.bf16.mxu0 %v3163_v56  ;;  %2181 = vmatprep.subr.bf16.mxu1 %v3166_v57  ;;  %v2249_v56 = vrot.slane (!%p2687_p6), %v2232_v43, %v2248_v49 }
 0x168   : > { %2010 = vmatpush1.bf16.msra.mxu0 %v3161_v58  ;;  %2182 = vmatpush1.bf16.msra.mxu1 %v3164_v59 }
 0x169   : > { %2011 = vmatprep.subr.bf16.mxu0 %v3169_v60  ;;  %2183 = vmatprep.subr.bf16.mxu1 %v3172_v61 }
 0x16c   : > { %2012 = vmatpush1.bf16.msra.mxu0 %v3167_v62  ;;  %2184 = vmatpush1.bf16.msra.mxu1 %v3170_v63 }
 0x16d   : > { %2013 = vmatprep.subr.bf16.mxu0 %v3175_v0  ;;  %2185 = vmatprep.subr.bf16.mxu1 %v3178_v1 }
 0x170   : > { %2014 = vmatpush1.bf16.msra.mxu0 %v3173_v2  ;;  %2186 = vmatpush1.bf16.msra.mxu1 %v3176_v3 }
 0x171   : > { %2015 = vmatprep.subr.bf16.mxu0 %v3181_v4  ;;  %2187 = vmatprep.subr.bf16.mxu1 %v3184_v5 }
 0x174   : > { %2016 = vmatpush1.bf16.msra.mxu0 %v3179_v6  ;;  %2188 = vmatpush1.bf16.msra.mxu1 %v3182_v7 }
 0x175   : > { %2017 = vmatprep.subr.bf16.mxu0 %v3187_v8  ;;  %2189 = vmatprep.subr.bf16.mxu1 %v3190_v9 }
 0x178   : > { %2018 = vmatpush1.bf16.msra.mxu0 %v3185_v10  ;;  %2190 = vmatpush1.bf16.msra.mxu1 %v3188_v11 }
 0x179   : > { %2019 = vmatprep.subr.bf16.mxu0 %v3193_v12  ;;  %2191 = vmatprep.subr.bf16.mxu1 %v3196_v13 }
 0x17c   : > { %2020 = vmatpush1.bf16.msra.mxu0 %v3191_v14  ;;  %2192 = vmatpush1.bf16.msra.mxu1 %v3194_v19 }
 0x17f   : > { %2022 = vmatmul.mubr.bf16.vlgmr.msra.gmra.mrb[0].mxu0 %v2429_v20  ;;  %2194 = vmatmul.mubr.bf16.vlgmr.msra.gmra.mrb[0].mxu1 %v2429_v20 }
 0x252   : > { %v2023_v23 = vpop.f32.mrb[0].mxu0  ;;  %v2195_v24 = vpop.f32.mrb[0].mxu1  ;;  %2223 = sbr.rel (%p2687_p6) target bundleno = 615 (0x267), region = 52 }
 0x253   : > { %v2204_v27 = vadd.f32 %v2023_v23, %v268_v21  ;;  %v2206_v28 = vadd.f32 %v2195_v24, %v270_v22  ;;  %v2025_v29 = vpop.f32.mrb[1].mxu0  ;;  %v2197_v30 = vpop.f32.mrb[1].mxu1 }
 0x254   : > { %v2205_v33 = vadd.f32 %v2025_v29, %v269_v15  ;;  %v2207_v17 = vadd.f32 %v2197_v30, %v271_v16  ;;  %v2027_v18 = vpop.f32.mrb[2].mxu0  ;;  %v2199_v34 = vpop.f32.mrb[2].mxu1 }
 0x255   : > { %2212 = vst [vmem:[#allocation2] sm:$0xff] %v2204_v27  ;;  %2214 = vst [vmem:[#allocation2 + $0x10] sm:$0xff] %v2206_v28  ;;  %v2208_v35 = vadd.f32 %v2027_v18, %v272_v25  ;;  %v2210_v36 = vadd.f32 %v2199_v34, %v274_v26  ;;  %v2029_v37 = vpop.f32.mrb[3].mxu0  ;;  %v2201_v38 = vpop.f32.mrb[3].mxu1 }
 0x256   : > { %2213 = vst [vmem:[#allocation2 + $0x8] sm:$0xff] %v2205_v33  ;;  %2215 = vst [vmem:[#allocation2 + $0x18] sm:$0xff] %v2207_v17  ;;  %v2209_v39 = vadd.f32 %v2029_v37, %v273_v31  ;;  %v2211_v40 = vadd.f32 %v2201_v38, %v275_v32 }
 0x257   : > { %2216 = vst [vmem:[#allocation2 + $0x20] sm:$0xff] %v2208_v35  ;;  %2218 = vst [vmem:[#allocation2 + $0x30] sm:$0xff] %v2210_v36 }
 0x258   : > { %2217 = vst [vmem:[#allocation2 + $0x28] sm:$0xff] %v2209_v39  ;;  %2219 = vst [vmem:[#allocation2 + $0x38] sm:$0xff] %v2211_v40 }
 0x25c   : > { %v2224_v44 = vld [vmem:[#allocation2] sm:$0xff]  ;;  %v2226_v50 = vld [vmem:[#allocation2 + $0x10] sm:$0xff] }
 0x25d   : > { %v2225_v45 = vld [vmem:[#allocation2 + $0x8] sm:$0xff]  ;;  %v2227_v51 = vld [vmem:[#allocation2 + $0x18] sm:$0xff]  ;;  %v2254_v60 = vadd.f32 %v2237_v53, %v2224_v44  ;;  %v2256_v62 = vadd.f32 %v2245_v55, %v2226_v50 }
 0x25e   : > { %v2228_v52 = vld [vmem:[#allocation2 + $0x20] sm:$0xff]  ;;  %v2230_v58 = vld [vmem:[#allocation2 + $0x30] sm:$0xff]  ;;  %v2255_v61 = vadd.f32 %v2241_v54, %v2225_v45  ;;  %v2257_v63 = vadd.f32 %v2249_v56, %v2227_v51 }
 0x25f   : > { %v2229_v57 = vld [vmem:[#allocation2 + $0x28] sm:$0xff]  ;;  %v2231_v59 = vld [vmem:[#allocation2 + $0x38] sm:$0xff]  ;;  %v2258_v0 = vadd.f32 %v2237_v53, %v2228_v52  ;;  %v2260_v2 = vadd.f32 %v2245_v55, %v2230_v58  ;;  %v2262_v4 = vmax.f32 %v2254_v60, 0.0  ;;  %v2264_v6 = vmax.f32 %v2256_v62, 0.0 }
 0x260   : > { %v2259_v1 = vadd.f32 %v2241_v54, %v2229_v57  ;;  %v2261_v3 = vadd.f32 %v2249_v56, %v2231_v59  ;;  %v2263_v5 = vmax.f32 %v2255_v61, 0.0  ;;  %v2265_v7 = vmax.f32 %v2257_v63, 0.0 }
 0x261   : > { %v2266_v8 = vmax.f32 %v2258_v0, 0.0  ;;  %v2268_v10 = vmax.f32 %v2260_v2, 0.0 }
 0x262   : > { %v2267_v9 = vmax.f32 %v2259_v1, 0.0  ;;  %v2269_v11 = vmax.f32 %v2261_v3, 0.0  ;;  %v2699_v12 = vpack.c.bf16 %v2263_v5, %v2262_v4  ;;  %v2700_v13 = vpack.c.bf16 %v2265_v7, %v2264_v6 }
 0x264   : > { %v2701_v14 = vpack.c.bf16 %v2267_v9, %v2266_v8  ;;  %v2702_v19 = vpack.c.bf16 %v2269_v11, %v2268_v10  ;;  %2294 = vst [vmem:[#allocation9] sm:$0xff] %v2699_v12  ;;  %2295 = vst [vmem:[#allocation9 + $0x8] sm:$0xff] %v2700_v13 }
 0x266   : > { %2296 = vst [vmem:[#allocation9 + $0x10] sm:$0xff] %v2701_v14  ;;  %2297 = vst [vmem:[#allocation9 + $0x18] sm:$0xff] %v2702_v19 }
 0x267 PF: > { %p2753_p8 = scmp.eq.s32.totalorder %s3436_s18, 1  ;;  %s3384_s15 = smov [#allocation9]  }
 0x268   : > { %s2308_s20 = sshll.u32 %s3384_s15, 4  ;;  %s2309_s20 = int_to_ptr.vmem [resolvable:$true] %s2308_s20 }
 0x269   : > { %s3285_s21 = scalar_lea.vmem %s2309_s20, 512  ;;  %p3292_p0 = scmp.lt.s32.totalorder %s2309_s20, %s2309_s20 }
 0x26a   : > { %p3286_p13 = scmp.ne.s32.totalorder %s2309_s20, %s3285_s21  ;;  %p3293_p5 = scmp.lt.s32.totalorder %s3285_s21, %s3285_s21 }
 0x26c   : > { %p3287_p1 = pnand %p3286_p13, %p2753_p8  ;;  %p3294_p7 = por %p3293_p5, %p3292_p0 }
 0x26e   : > { %p3288_p2 = pneg %p3287_p1 }
 0x270   : > { %p3295_p9 = pnand %p3294_p7, %p3288_p2 }
 0x272   : > { %3298 = shalt.err (!%p3295_p9)
}
 0x273   : > { %s3299_s5 = scalar_lea.hbm %s3927_s3, 512 }
 0x274   : > { %p3300_p12 = scmp.ne.s32.totalorder %s3927_s3, %s3299_s5  ;;  %p3305_p10 = scmp.lt.u32.totalorder %s3299_s5, %s3927_s3 }
 0x276   : > { %p3301_p4 = pnand %p3300_p12, %p2753_p8 }
 0x278   : > { %p3302_p11 = pneg %p3301_p4 }
 0x27a   : > { %p3307_p3 = pnand %p3305_p10, %p3302_p11 }
 0x27c   : > { %3310 = shalt.err (!%p3307_p3)
}
 0x27d   : > { %s3385_s8 = smov 256   ;;  %s3386_s0 = smov 16  }
 0x27e   : > { %2736 = dma.vmem_to_hbm [thread:$0]  (%p2753_p8), %s2309_s20, 512, %s3927_s3, [#allocation5], %s3385_s8, %s3385_s8, %s3386_s0  }
 0x27f   : > { %3348 = dma.done.wait (%p2753_p8), [#allocation5], 512  }
 0x280   : > { %3350 = vsyncadd (%p2753_p8), [#allocation5], 4294966784 }
 0x281 PF: > { %s20_s17 = sadd.s32 1, %s3373_s17   ;;  %s3943_s12 = smov %s3357_s13 }
 0x282   : > { %p17_p6 = scmp.ge.s32.totalorder %s20_s17, 4   ;;  %s3944_s13 = smov %s3361_s14 }
 0x283   : > { %s3945_s14 = smov %s3506_s4  ;;  %s3946_s15 = smov %s3369_s16 }
 0x284   : > { %s3947_s16 = smov %s3949_s10  ;;  %19 = sbr.rel (!%p17_p6) target bundleno = 9 (0x9), region = 95 }
 0x28b   :  { %2324 = vsyncpa [#allocation4], 1 }
 0x28c   :  { %2326 = vsyncpa [#allocation4 + $0x1], 1 }
 0x28d   :  { %2327 = vsyncpa [#allocation7], 1 }
 0x28e   :  { %2329 = vsyncpa [#allocation7 + $0x1], 1 }
 0x28f   :  { %2330 = vsyncpa [#allocation5], 1 }
 0x290   :  { %2332 = vsyncpa [#allocation5 + $0x1], 1 }

</bundles_post_ra>
